<compile_context>
chip_gen: v5e
topology: v5e:2x2
jax: 0.10.0
libtpu: 0.0.40
codegen_flags: <defaults>
</compile_context>

<pallas_src>
import functools

import jax
import jax.numpy as jnp
from jax import lax
from jax.experimental import pallas as pl
from jax.experimental.pallas import tpu as pltpu


# ------------------------------ Pallas kernel ------------------------------ #

def _resnet_block22_kernel(x_ref, w1_ref, b1_ref, w2_ref, b2_ref, out_ref,
                           p_ref, *, H, W):
    """out = x + conv2(pad(relu(conv1(pad(x))))), channels-on-sublanes layout.

    x_ref  : (B*C, H*W)          f32   whole batch, flat spatial on lanes
    w*_ref : (9, B*C, B*C)       bf16  per-tap kron(I_B, W[kh,kw]^T)
    b*_ref : (B*C, 1)            f32   per-row (per out-channel) bias
    out_ref: (B*C, H*W)          f32
    p_ref  : (B*C, (H+2)*W + 2)  bf16  height-padded image, 1 guard lane/side
    """
    BC, HW = out_ref.shape
    G = 1                                          # guard lanes on each side

    # Lane masks for the width-reflection fix-up (hoisted, computed once).
    w_idx = lax.broadcasted_iota(jnp.int32, (BC, HW), 1) % W
    is_w_first = w_idx == 0
    is_w_last = w_idx == (W - 1)

    # Guard lanes are never *selected* into any result; zero once for hygiene.
    p_ref[:, 0:G] = jnp.zeros((BC, G), p_ref.dtype)
    p_ref[:, G + (H + 2) * W:2 * G + (H + 2) * W] = jnp.zeros((BC, G), p_ref.dtype)

    def reflect_pad_rows(vals):
        """Height-reflected padding of vals (B*C, H*W) written into p_ref."""
        v = vals.astype(p_ref.dtype)                              # -> bf16 once
        p_ref[:, G + W:G + W + HW] = v                            # interior
        p_ref[:, G:G + W] = v[:, W:2 * W]                         # top   = row 1
        p_ref[:, G + (H + 1) * W:G + (H + 2) * W] = v[:, (H - 2) * W:(H - 1) * W]

    def conv3x3(w_ref, b_ref):
        """3x3 reflect-pad conv over p_ref, + bias.  Returns (B*C, H*W) f32."""
        acc = jnp.zeros((BC, HW), jnp.float32)
        for kh in range(3):
            base = G + kh * W
            # Static lane-offset slices of the flat padded buffer (bf16).
            s_m1 = p_ref[:, base - 1:base - 1 + HW]   # column shift -1 (raw)
            s_0 = p_ref[:, base:base + HW]            # column shift  0
            s_p1 = p_ref[:, base + 1:base + 1 + HW]   # column shift +1 (raw)
            taps = (
                jnp.where(is_w_first, s_p1, s_m1),    # kw=0: reflect at w == 0
                s_0,                                  # kw=1
                jnp.where(is_w_last, s_m1, s_p1),     # kw=2: reflect at w == W-1
            )
            for kw in range(3):
                acc = acc + jnp.dot(w_ref[kh * 3 + kw], taps[kw],
                                    preferred_element_type=jnp.float32)
        return acc + b_ref[...]                        # (B*C, 1) broadcasts, f32

    x = x_ref[...]                                     # f32, kept for residual
    reflect_pad_rows(x)
    h = jnp.maximum(conv3x3(w1_ref, b1_ref), 0.0)      # conv1 + bias + ReLU (f32)
    reflect_pad_rows(h)                                # reuse the same pad buffer
    y = conv3x3(w2_ref, b2_ref)                        # conv2 + bias
    out_ref[...] = (y + x).astype(out_ref.dtype)       # residual, lane-dense store


# ------------------------------ host wrappers ------------------------------ #

def _prep_tap_weights(w_hwio, B):
    """(3,3,Cin,Cout) HWIO -> (9, B*Cout, B*Cin) bf16 = per-tap kron(I_B, W^T)."""
    C = w_hwio.shape[2]
    wt = jnp.transpose(w_hwio, (0, 1, 3, 2)).reshape(9, C, C)   # (9, Cout, Cin)
    eye = jnp.eye(B, dtype=w_hwio.dtype)
    wbig = jnp.einsum("bd,toi->tbodi", eye, wt).reshape(9, B * C, B * C)
    return wbig.astype(jnp.bfloat16)


def _prep_bias(b, B):
    """(1, C) -> (B*C, 1) f32 (bias broadcast over the lane/pixel axis)."""
    C = b.shape[-1]
    return jnp.tile(b.reshape(C, 1), (B, 1)).astype(jnp.float32)


def _make_block_call(BC, H, W):
    HW = H * W
    kernel = functools.partial(_resnet_block22_kernel, H=H, W=W)
    flops = 2 * (2 * HW * 9 * BC * BC)                     # two convs
    bytes_accessed = 2 * BC * HW * 4 + 2 * 9 * BC * BC * 2 + 2 * BC * 4
    return pl.pallas_call(
        kernel,
        out_shape=jax.ShapeDtypeStruct((BC, HW), jnp.float32),
        grid=(1,),                                          # whole batch, one step
        in_specs=[
            pl.BlockSpec((BC, HW), lambda i: (0, 0)),       # x
            pl.BlockSpec((9, BC, BC), lambda i: (0, 0, 0)),  # w1 taps (bf16)
            pl.BlockSpec((BC, 1), lambda i: (0, 0)),         # b1
            pl.BlockSpec((9, BC, BC), lambda i: (0, 0, 0)),  # w2 taps (bf16)
            pl.BlockSpec((BC, 1), lambda i: (0, 0)),         # b2
        ],
        out_specs=pl.BlockSpec((BC, HW), lambda i: (0, 0)),
        scratch_shapes=[
            pltpu.VMEM((BC, (H + 2) * W + 2), jnp.bfloat16),  # padded image P
        ],
        input_output_aliases={0: 0},                         # out reuses x's HBM
        compiler_params=pltpu.CompilerParams(
            dimension_semantics=("arbitrary",),
        ),
        cost_estimate=pl.CostEstimate(
            flops=flops, transcendentals=0, bytes_accessed=bytes_accessed),
    )


@jax.jit
def resnet_block22_forward(x_nchw, params):
    """ResnetBlock22: padding_type='reflect', activation=ReLU, no dropout."""
    w1, b1, w2, b2 = params
    B, C, H, W = x_nchw.shape
    x2d = x_nchw.reshape(B * C, H * W).astype(jnp.float32)   # pure reshape, no transpose
    out2d = _make_block_call(B * C, H, W)(
        x2d,
        _prep_tap_weights(w1, B), _prep_bias(b1, B),
        _prep_tap_weights(w2, B), _prep_bias(b2, B),
    )
    return out2d.reshape(B, C, H, W)


def init_params(key, dim):
    """Deterministic synthetic parameters (HWIO weights, (1, C) biases)."""
    k1, k2, k3, k4 = jax.random.split(key, 4)
    fan_in = dim * 3 * 3
    bound = 1.0 / jnp.sqrt(fan_in)
    w1 = jax.random.uniform(k1, (3, 3, dim, dim), jnp.float32, -bound, bound)
    b1 = jax.random.uniform(k2, (1, dim), jnp.float32, -bound, bound)
    w2 = jax.random.uniform(k3, (3, 3, dim, dim), jnp.float32, -bound, bound)
    b2 = jax.random.uniform(k4, (1, dim), jnp.float32, -bound, bound)
    return w1, b1, w2, b2


# -------------------------------- reference -------------------------------- #

def _reference(x_nchw, params):
    """Pure-JAX reference with the same bf16-input / f32-accumulate policy."""
    w1, b1, w2, b2 = params
    xh = jnp.transpose(x_nchw, (0, 2, 3, 1)).astype(jnp.float32)

    def conv(inp, w, b):
        p = jnp.pad(inp, ((0, 0), (1, 1), (1, 1), (0, 0)), mode="reflect")
        y = jax.lax.conv_general_dilated(
            p.astype(jnp.bfloat16), w.astype(jnp.bfloat16),
            window_strides=(1, 1), padding="VALID",
            dimension_numbers=("NHWC", "HWIO", "NHWC"),
            preferred_element_type=jnp.float32)
        return y + b.reshape(1, 1, 1, -1)

    h = jnp.maximum(conv(xh, w1, b1), 0.0)
    o = conv(h, w2, b2) + xh
    return jnp.transpose(o, (0, 3, 1, 2))


# ----------------------------------- main ----------------------------------- #

if __name__ == "__main__":
    B, C, H, W = 2, 4, 16, 16
    key = jax.random.PRNGKey(0)
    kx, kp = jax.random.split(key)
    x = jax.random.normal(kx, (B, C, H, W), jnp.float32)
    params = init_params(kp, C)

    out = jax.block_until_ready(resnet_block22_forward(x, params))

    expected = _reference(x, params)
    assert out.shape == (B, C, H, W)
    max_err = float(jnp.max(jnp.abs(out - expected)))
    assert jnp.allclose(out, expected, atol=2e-3, rtol=2e-3), max_err
    print("KERNEL_OK")
</pallas_src>

<mosaic_0001>
module attributes {stable_mosaic.version = 11 : i64} {
  func.func @_resnet_block22_kernel(%arg0: i32, %arg1: memref<8x256xf32, #tpu.memory_space<vmem>>, %arg2: memref<9x8x8xbf16, #tpu.memory_space<vmem>>, %arg3: memref<8x1xf32, #tpu.memory_space<vmem>>, %arg4: memref<9x8x8xbf16, #tpu.memory_space<vmem>>, %arg5: memref<8x1xf32, #tpu.memory_space<vmem>>, %arg6: memref<8x256xf32, #tpu.memory_space<vmem>>, %arg7: memref<8x290xbf16, #tpu.memory_space<vmem>>) attributes {dimension_semantics = [#tpu.dimension_semantics<arbitrary>], iteration_bounds = array<i64: 1>, scalar_prefetch = 0 : i64, scratch_operands = 1 : i64, tpu.core_type = #tpu.core_type<tc>, window_params = [{pipeline_mode = #tpu.pipeline_mode<synchronous>, transform_indices = @transform_0, window_bounds = array<i64: 8, 256>}, {pipeline_mode = #tpu.pipeline_mode<synchronous>, transform_indices = @transform_1, window_bounds = array<i64: 9, 8, 8>}, {pipeline_mode = #tpu.pipeline_mode<synchronous>, transform_indices = @transform_2, window_bounds = array<i64: 8, 1>}, {pipeline_mode = #tpu.pipeline_mode<synchronous>, transform_indices = @transform_3, window_bounds = array<i64: 9, 8, 8>}, {pipeline_mode = #tpu.pipeline_mode<synchronous>, transform_indices = @transform_4, window_bounds = array<i64: 8, 1>}, {pipeline_mode = #tpu.pipeline_mode<synchronous>, transform_indices = @transform_5, window_bounds = array<i64: 8, 256>}]} {
    %0 = tpu.iota {dimensions = array<i32: 1>} : vector<8x256xi32>
    %c16_i32 = arith.constant 16 : i32
    %c0_i32 = arith.constant 0 : i32
    %1 = arith.cmpi eq, %c16_i32, %c0_i32 : i32
    %c1_i32 = arith.constant 1 : i32
    %2 = arith.select %1, %c1_i32, %c16_i32 : i32
    %3 = vector.broadcast %2 : i32 to vector<8x256xi32>
    %4 = arith.remsi %0, %3 : vector<8x256xi32>
    %c0_i32_0 = arith.constant 0 : i32
    %5 = vector.broadcast %c0_i32_0 : i32 to vector<8x256xi32>
    %6 = arith.cmpi ne, %4, %5 : vector<8x256xi32>
    %c0_i32_1 = arith.constant 0 : i32
    %7 = vector.broadcast %c0_i32_1 : i32 to vector<8x256xi32>
    %8 = arith.cmpi slt, %4, %7 : vector<8x256xi32>
    %c0_i32_2 = arith.constant 0 : i32
    %9 = arith.cmpi slt, %2, %c0_i32_2 : i32
    %10 = vector.broadcast %9 : i1 to vector<8x256xi1>
    %11 = vector.broadcast %10 : vector<8x256xi1> to vector<8x256xi1>
    %12 = arith.xori %8, %11 : vector<8x256xi1>
    %13 = arith.andi %12, %6 : vector<8x256xi1>
    %14 = vector.broadcast %2 : i32 to vector<8x256xi32>
    %15 = arith.addi %4, %14 : vector<8x256xi32>
    %16 = arith.select %13, %15, %4 : vector<8x256xi1>, vector<8x256xi32>
    %c0_i32_3 = arith.constant 0 : i32
    %17 = vector.broadcast %c0_i32_3 : i32 to vector<8x256xi32>
    %18 = arith.cmpi eq, %16, %17 : vector<8x256xi32>
    %c15_i32 = arith.constant 15 : i32
    %19 = vector.broadcast %c15_i32 : i32 to vector<8x256xi32>
    %20 = arith.cmpi eq, %16, %19 : vector<8x256xi32>
    %cst = arith.constant 0.000000e+00 : bf16
    %21 = vector.broadcast %cst : bf16 to vector<8x1xbf16>
    %c0 = arith.constant 0 : index
    %c0_4 = arith.constant 0 : index
    %22 = vector.load %arg7[%c0, %c0_4] : memref<8x290xbf16, #tpu.memory_space<vmem>>, vector<8x1xbf16>
    tpu.vector_store %arg7[%c0, %c0_4], %21 {strides = array<i32>} : memref<8x290xbf16, #tpu.memory_space<vmem>>, vector<8x1xbf16>,
    %cst_5 = arith.constant 0.000000e+00 : bf16
    %23 = vector.broadcast %cst_5 : bf16 to vector<8x1xbf16>
    %c0_6 = arith.constant 0 : index
    %c289 = arith.constant 289 : index
    %24 = vector.load %arg7[%c0_6, %c289] : memref<8x290xbf16, #tpu.memory_space<vmem>>, vector<8x1xbf16>
    tpu.vector_store %arg7[%c0_6, %c289], %23 {strides = array<i32>} : memref<8x290xbf16, #tpu.memory_space<vmem>>, vector<8x1xbf16>,
    %c0_7 = arith.constant 0 : index
    %c0_8 = arith.constant 0 : index
    %25 = vector.load %arg1[%c0_7, %c0_8] : memref<8x256xf32, #tpu.memory_space<vmem>>, vector<8x256xf32>
    %26 = arith.truncf %25 : vector<8x256xf32> to vector<8x256xbf16>
    %c0_9 = arith.constant 0 : index
    %c17 = arith.constant 17 : index
    %27 = vector.load %arg7[%c0_9, %c17] : memref<8x290xbf16, #tpu.memory_space<vmem>>, vector<8x256xbf16>
    tpu.vector_store %arg7[%c0_9, %c17], %26 {strides = array<i32>} : memref<8x290xbf16, #tpu.memory_space<vmem>>, vector<8x256xbf16>,
    %28 = vector.extract_strided_slice %26 {offsets = [0, 16], sizes = [8, 16], strides = [1, 1]} : vector<8x256xbf16> to vector<8x16xbf16>
    %c0_10 = arith.constant 0 : index
    %c1 = arith.constant 1 : index
    %29 = vector.load %arg7[%c0_10, %c1] : memref<8x290xbf16, #tpu.memory_space<vmem>>, vector<8x16xbf16>
    tpu.vector_store %arg7[%c0_10, %c1], %28 {strides = array<i32>} : memref<8x290xbf16, #tpu.memory_space<vmem>>, vector<8x16xbf16>,
    %30 = vector.extract_strided_slice %26 {offsets = [0, 224], sizes = [8, 16], strides = [1, 1]} : vector<8x256xbf16> to vector<8x16xbf16>
    %c0_11 = arith.constant 0 : index
    %c273 = arith.constant 273 : index
    %31 = vector.load %arg7[%c0_11, %c273] : memref<8x290xbf16, #tpu.memory_space<vmem>>, vector<8x16xbf16>
    tpu.vector_store %arg7[%c0_11, %c273], %30 {strides = array<i32>} : memref<8x290xbf16, #tpu.memory_space<vmem>>, vector<8x16xbf16>,
    %cst_12 = arith.constant 0.000000e+00 : f32
    %32 = vector.broadcast %cst_12 : f32 to vector<8x256xf32>
    %c0_13 = arith.constant 0 : index
    %c0_14 = arith.constant 0 : index
    %33 = vector.load %arg7[%c0_13, %c0_14] : memref<8x290xbf16, #tpu.memory_space<vmem>>, vector<8x256xbf16>
    %c0_15 = arith.constant 0 : index
    %c1_16 = arith.constant 1 : index
    %34 = vector.load %arg7[%c0_15, %c1_16] : memref<8x290xbf16, #tpu.memory_space<vmem>>, vector<8x256xbf16>
    %c0_17 = arith.constant 0 : index
    %c2 = arith.constant 2 : index
    %35 = vector.load %arg7[%c0_17, %c2] : memref<8x290xbf16, #tpu.memory_space<vmem>>, vector<8x256xbf16>
    %36 = arith.select %18, %35, %33 : vector<8x256xi1>, vector<8x256xbf16>
    %37 = arith.select %20, %33, %35 : vector<8x256xi1>, vector<8x256xbf16>
    %c0_18 = arith.constant 0 : index
    %c0_19 = arith.constant 0 : index
    %c0_20 = arith.constant 0 : index
    %38 = vector.load %arg2[%c0_18, %c0_19, %c0_20] : memref<9x8x8xbf16, #tpu.memory_space<vmem>>, vector<1x8x8xbf16>
    %39 = vector.shape_cast %38 : vector<1x8x8xbf16> to vector<8x8xbf16>
    %cst_21 = arith.constant dense<0.000000e+00> : vector<8x256xf32>
    %40 = tpu.matmul %39, %36, %cst_21 {dimension_numbers = #tpu.dot_dimension_numbers<[1], [0], [0], [1], [0, 0, 1, 1], [], []>} : vector<8x8xbf16>, vector<8x256xbf16>, vector<8x256xf32> -> vector<8x256xf32>
    %41 = arith.addf %32, %40 : vector<8x256xf32>
    %c1_22 = arith.constant 1 : index
    %c0_23 = arith.constant 0 : index
    %c0_24 = arith.constant 0 : index
    %42 = vector.load %arg2[%c1_22, %c0_23, %c0_24] : memref<9x8x8xbf16, #tpu.memory_space<vmem>>, vector<1x8x8xbf16>
    %43 = vector.shape_cast %42 : vector<1x8x8xbf16> to vector<8x8xbf16>
    %cst_25 = arith.constant dense<0.000000e+00> : vector<8x256xf32>
    %44 = tpu.matmul %43, %34, %cst_25 {dimension_numbers = #tpu.dot_dimension_numbers<[1], [0], [0], [1], [0, 0, 1, 1], [], []>} : vector<8x8xbf16>, vector<8x256xbf16>, vector<8x256xf32> -> vector<8x256xf32>
    %45 = arith.addf %41, %44 : vector<8x256xf32>
    %c2_26 = arith.constant 2 : index
    %c0_27 = arith.constant 0 : index
    %c0_28 = arith.constant 0 : index
    %46 = vector.load %arg2[%c2_26, %c0_27, %c0_28] : memref<9x8x8xbf16, #tpu.memory_space<vmem>>, vector<1x8x8xbf16>
    %47 = vector.shape_cast %46 : vector<1x8x8xbf16> to vector<8x8xbf16>
    %cst_29 = arith.constant dense<0.000000e+00> : vector<8x256xf32>
    %48 = tpu.matmul %47, %37, %cst_29 {dimension_numbers = #tpu.dot_dimension_numbers<[1], [0], [0], [1], [0, 0, 1, 1], [], []>} : vector<8x8xbf16>, vector<8x256xbf16>, vector<8x256xf32> -> vector<8x256xf32>
    %49 = arith.addf %45, %48 : vector<8x256xf32>
    %c0_30 = arith.constant 0 : index
    %c16 = arith.constant 16 : index
    %50 = vector.load %arg7[%c0_30, %c16] : memref<8x290xbf16, #tpu.memory_space<vmem>>, vector<8x256xbf16>
    %c0_31 = arith.constant 0 : index
    %c17_32 = arith.constant 17 : index
    %51 = vector.load %arg7[%c0_31, %c17_32] : memref<8x290xbf16, #tpu.memory_space<vmem>>, vector<8x256xbf16>
    %c0_33 = arith.constant 0 : index
    %c18 = arith.constant 18 : index
    %52 = vector.load %arg7[%c0_33, %c18] : memref<8x290xbf16, #tpu.memory_space<vmem>>, vector<8x256xbf16>
    %53 = arith.select %18, %52, %50 : vector<8x256xi1>, vector<8x256xbf16>
    %54 = arith.select %20, %50, %52 : vector<8x256xi1>, vector<8x256xbf16>
    %c3 = arith.constant 3 : index
    %c0_34 = arith.constant 0 : index
    %c0_35 = arith.constant 0 : index
    %55 = vector.load %arg2[%c3, %c0_34, %c0_35] : memref<9x8x8xbf16, #tpu.memory_space<vmem>>, vector<1x8x8xbf16>
    %56 = vector.shape_cast %55 : vector<1x8x8xbf16> to vector<8x8xbf16>
    %cst_36 = arith.constant dense<0.000000e+00> : vector<8x256xf32>
    %57 = tpu.matmul %56, %53, %cst_36 {dimension_numbers = #tpu.dot_dimension_numbers<[1], [0], [0], [1], [0, 0, 1, 1], [], []>} : vector<8x8xbf16>, vector<8x256xbf16>, vector<8x256xf32> -> vector<8x256xf32>
    %58 = arith.addf %49, %57 : vector<8x256xf32>
    %c4 = arith.constant 4 : index
    %c0_37 = arith.constant 0 : index
    %c0_38 = arith.constant 0 : index
    %59 = vector.load %arg2[%c4, %c0_37, %c0_38] : memref<9x8x8xbf16, #tpu.memory_space<vmem>>, vector<1x8x8xbf16>
    %60 = vector.shape_cast %59 : vector<1x8x8xbf16> to vector<8x8xbf16>
    %cst_39 = arith.constant dense<0.000000e+00> : vector<8x256xf32>
    %61 = tpu.matmul %60, %51, %cst_39 {dimension_numbers = #tpu.dot_dimension_numbers<[1], [0], [0], [1], [0, 0, 1, 1], [], []>} : vector<8x8xbf16>, vector<8x256xbf16>, vector<8x256xf32> -> vector<8x256xf32>
    %62 = arith.addf %58, %61 : vector<8x256xf32>
    %c5 = arith.constant 5 : index
    %c0_40 = arith.constant 0 : index
    %c0_41 = arith.constant 0 : index
    %63 = vector.load %arg2[%c5, %c0_40, %c0_41] : memref<9x8x8xbf16, #tpu.memory_space<vmem>>, vector<1x8x8xbf16>
    %64 = vector.shape_cast %63 : vector<1x8x8xbf16> to vector<8x8xbf16>
    %cst_42 = arith.constant dense<0.000000e+00> : vector<8x256xf32>
    %65 = tpu.matmul %64, %54, %cst_42 {dimension_numbers = #tpu.dot_dimension_numbers<[1], [0], [0], [1], [0, 0, 1, 1], [], []>} : vector<8x8xbf16>, vector<8x256xbf16>, vector<8x256xf32> -> vector<8x256xf32>
    %66 = arith.addf %62, %65 : vector<8x256xf32>
    %c0_43 = arith.constant 0 : index
    %c32 = arith.constant 32 : index
    %67 = vector.load %arg7[%c0_43, %c32] : memref<8x290xbf16, #tpu.memory_space<vmem>>, vector<8x256xbf16>
    %c0_44 = arith.constant 0 : index
    %c33 = arith.constant 33 : index
    %68 = vector.load %arg7[%c0_44, %c33] : memref<8x290xbf16, #tpu.memory_space<vmem>>, vector<8x256xbf16>
    %c0_45 = arith.constant 0 : index
    %c34 = arith.constant 34 : index
    %69 = vector.load %arg7[%c0_45, %c34] : memref<8x290xbf16, #tpu.memory_space<vmem>>, vector<8x256xbf16>
    %70 = arith.select %18, %69, %67 : vector<8x256xi1>, vector<8x256xbf16>
    %71 = arith.select %20, %67, %69 : vector<8x256xi1>, vector<8x256xbf16>
    %c6 = arith.constant 6 : index
    %c0_46 = arith.constant 0 : index
    %c0_47 = arith.constant 0 : index
    %72 = vector.load %arg2[%c6, %c0_46, %c0_47] : memref<9x8x8xbf16, #tpu.memory_space<vmem>>, vector<1x8x8xbf16>
    %73 = vector.shape_cast %72 : vector<1x8x8xbf16> to vector<8x8xbf16>
    %cst_48 = arith.constant dense<0.000000e+00> : vector<8x256xf32>
    %74 = tpu.matmul %73, %70, %cst_48 {dimension_numbers = #tpu.dot_dimension_numbers<[1], [0], [0], [1], [0, 0, 1, 1], [], []>} : vector<8x8xbf16>, vector<8x256xbf16>, vector<8x256xf32> -> vector<8x256xf32>
    %75 = arith.addf %66, %74 : vector<8x256xf32>
    %c7 = arith.constant 7 : index
    %c0_49 = arith.constant 0 : index
    %c0_50 = arith.constant 0 : index
    %76 = vector.load %arg2[%c7, %c0_49, %c0_50] : memref<9x8x8xbf16, #tpu.memory_space<vmem>>, vector<1x8x8xbf16>
    %77 = vector.shape_cast %76 : vector<1x8x8xbf16> to vector<8x8xbf16>
    %cst_51 = arith.constant dense<0.000000e+00> : vector<8x256xf32>
    %78 = tpu.matmul %77, %68, %cst_51 {dimension_numbers = #tpu.dot_dimension_numbers<[1], [0], [0], [1], [0, 0, 1, 1], [], []>} : vector<8x8xbf16>, vector<8x256xbf16>, vector<8x256xf32> -> vector<8x256xf32>
    %79 = arith.addf %75, %78 : vector<8x256xf32>
    %c8 = arith.constant 8 : index
    %c0_52 = arith.constant 0 : index
    %c0_53 = arith.constant 0 : index
    %80 = vector.load %arg2[%c8, %c0_52, %c0_53] : memref<9x8x8xbf16, #tpu.memory_space<vmem>>, vector<1x8x8xbf16>
    %81 = vector.shape_cast %80 : vector<1x8x8xbf16> to vector<8x8xbf16>
    %cst_54 = arith.constant dense<0.000000e+00> : vector<8x256xf32>
    %82 = tpu.matmul %81, %71, %cst_54 {dimension_numbers = #tpu.dot_dimension_numbers<[1], [0], [0], [1], [0, 0, 1, 1], [], []>} : vector<8x8xbf16>, vector<8x256xbf16>, vector<8x256xf32> -> vector<8x256xf32>
    %83 = arith.addf %79, %82 : vector<8x256xf32>
    %c0_55 = arith.constant 0 : index
    %c0_56 = arith.constant 0 : index
    %84 = vector.load %arg3[%c0_55, %c0_56] : memref<8x1xf32, #tpu.memory_space<vmem>>, vector<8x1xf32>
    %85 = vector.broadcast %84 : vector<8x1xf32> to vector<8x256xf32>
    %86 = arith.addf %83, %85 : vector<8x256xf32>
    %cst_57 = arith.constant 0.000000e+00 : f32
    %87 = vector.broadcast %cst_57 : f32 to vector<8x256xf32>
    %88 = arith.maximumf %86, %87 : vector<8x256xf32>
    %89 = arith.truncf %88 : vector<8x256xf32> to vector<8x256xbf16>
    %c0_58 = arith.constant 0 : index
    %c17_59 = arith.constant 17 : index
    %90 = vector.load %arg7[%c0_58, %c17_59] : memref<8x290xbf16, #tpu.memory_space<vmem>>, vector<8x256xbf16>
    tpu.vector_store %arg7[%c0_58, %c17_59], %89 {strides = array<i32>} : memref<8x290xbf16, #tpu.memory_space<vmem>>, vector<8x256xbf16>,
    %91 = vector.extract_strided_slice %89 {offsets = [0, 16], sizes = [8, 16], strides = [1, 1]} : vector<8x256xbf16> to vector<8x16xbf16>
    %c0_60 = arith.constant 0 : index
    %c1_61 = arith.constant 1 : index
    %92 = vector.load %arg7[%c0_60, %c1_61] : memref<8x290xbf16, #tpu.memory_space<vmem>>, vector<8x16xbf16>
    tpu.vector_store %arg7[%c0_60, %c1_61], %91 {strides = array<i32>} : memref<8x290xbf16, #tpu.memory_space<vmem>>, vector<8x16xbf16>,
    %93 = vector.extract_strided_slice %89 {offsets = [0, 224], sizes = [8, 16], strides = [1, 1]} : vector<8x256xbf16> to vector<8x16xbf16>
    %c0_62 = arith.constant 0 : index
    %c273_63 = arith.constant 273 : index
    %94 = vector.load %arg7[%c0_62, %c273_63] : memref<8x290xbf16, #tpu.memory_space<vmem>>, vector<8x16xbf16>
    tpu.vector_store %arg7[%c0_62, %c273_63], %93 {strides = array<i32>} : memref<8x290xbf16, #tpu.memory_space<vmem>>, vector<8x16xbf16>,
    %cst_64 = arith.constant 0.000000e+00 : f32
    %95 = vector.broadcast %cst_64 : f32 to vector<8x256xf32>
    %c0_65 = arith.constant 0 : index
    %c0_66 = arith.constant 0 : index
    %96 = vector.load %arg7[%c0_65, %c0_66] : memref<8x290xbf16, #tpu.memory_space<vmem>>, vector<8x256xbf16>
    %c0_67 = arith.constant 0 : index
    %c1_68 = arith.constant 1 : index
    %97 = vector.load %arg7[%c0_67, %c1_68] : memref<8x290xbf16, #tpu.memory_space<vmem>>, vector<8x256xbf16>
    %c0_69 = arith.constant 0 : index
    %c2_70 = arith.constant 2 : index
    %98 = vector.load %arg7[%c0_69, %c2_70] : memref<8x290xbf16, #tpu.memory_space<vmem>>, vector<8x256xbf16>
    %99 = arith.select %18, %98, %96 : vector<8x256xi1>, vector<8x256xbf16>
    %100 = arith.select %20, %96, %98 : vector<8x256xi1>, vector<8x256xbf16>
    %c0_71 = arith.constant 0 : index
    %c0_72 = arith.constant 0 : index
    %c0_73 = arith.constant 0 : index
    %101 = vector.load %arg4[%c0_71, %c0_72, %c0_73] : memref<9x8x8xbf16, #tpu.memory_space<vmem>>, vector<1x8x8xbf16>
    %102 = vector.shape_cast %101 : vector<1x8x8xbf16> to vector<8x8xbf16>
    %cst_74 = arith.constant dense<0.000000e+00> : vector<8x256xf32>
    %103 = tpu.matmul %102, %99, %cst_74 {dimension_numbers = #tpu.dot_dimension_numbers<[1], [0], [0], [1], [0, 0, 1, 1], [], []>} : vector<8x8xbf16>, vector<8x256xbf16>, vector<8x256xf32> -> vector<8x256xf32>
    %104 = arith.addf %95, %103 : vector<8x256xf32>
    %c1_75 = arith.constant 1 : index
    %c0_76 = arith.constant 0 : index
    %c0_77 = arith.constant 0 : index
    %105 = vector.load %arg4[%c1_75, %c0_76, %c0_77] : memref<9x8x8xbf16, #tpu.memory_space<vmem>>, vector<1x8x8xbf16>
    %106 = vector.shape_cast %105 : vector<1x8x8xbf16> to vector<8x8xbf16>
    %cst_78 = arith.constant dense<0.000000e+00> : vector<8x256xf32>
    %107 = tpu.matmul %106, %97, %cst_78 {dimension_numbers = #tpu.dot_dimension_numbers<[1], [0], [0], [1], [0, 0, 1, 1], [], []>} : vector<8x8xbf16>, vector<8x256xbf16>, vector<8x256xf32> -> vector<8x256xf32>
    %108 = arith.addf %104, %107 : vector<8x256xf32>
    %c2_79 = arith.constant 2 : index
    %c0_80 = arith.constant 0 : index
    %c0_81 = arith.constant 0 : index
    %109 = vector.load %arg4[%c2_79, %c0_80, %c0_81] : memref<9x8x8xbf16, #tpu.memory_space<vmem>>, vector<1x8x8xbf16>
    %110 = vector.shape_cast %109 : vector<1x8x8xbf16> to vector<8x8xbf16>
    %cst_82 = arith.constant dense<0.000000e+00> : vector<8x256xf32>
    %111 = tpu.matmul %110, %100, %cst_82 {dimension_numbers = #tpu.dot_dimension_numbers<[1], [0], [0], [1], [0, 0, 1, 1], [], []>} : vector<8x8xbf16>, vector<8x256xbf16>, vector<8x256xf32> -> vector<8x256xf32>
    %112 = arith.addf %108, %111 : vector<8x256xf32>
    %c0_83 = arith.constant 0 : index
    %c16_84 = arith.constant 16 : index
    %113 = vector.load %arg7[%c0_83, %c16_84] : memref<8x290xbf16, #tpu.memory_space<vmem>>, vector<8x256xbf16>
    %c0_85 = arith.constant 0 : index
    %c17_86 = arith.constant 17 : index
    %114 = vector.load %arg7[%c0_85, %c17_86] : memref<8x290xbf16, #tpu.memory_space<vmem>>, vector<8x256xbf16>
    %c0_87 = arith.constant 0 : index
    %c18_88 = arith.constant 18 : index
    %115 = vector.load %arg7[%c0_87, %c18_88] : memref<8x290xbf16, #tpu.memory_space<vmem>>, vector<8x256xbf16>
    %116 = arith.select %18, %115, %113 : vector<8x256xi1>, vector<8x256xbf16>
    %117 = arith.select %20, %113, %115 : vector<8x256xi1>, vector<8x256xbf16>
    %c3_89 = arith.constant 3 : index
    %c0_90 = arith.constant 0 : index
    %c0_91 = arith.constant 0 : index
    %118 = vector.load %arg4[%c3_89, %c0_90, %c0_91] : memref<9x8x8xbf16, #tpu.memory_space<vmem>>, vector<1x8x8xbf16>
    %119 = vector.shape_cast %118 : vector<1x8x8xbf16> to vector<8x8xbf16>
    %cst_92 = arith.constant dense<0.000000e+00> : vector<8x256xf32>
    %120 = tpu.matmul %119, %116, %cst_92 {dimension_numbers = #tpu.dot_dimension_numbers<[1], [0], [0], [1], [0, 0, 1, 1], [], []>} : vector<8x8xbf16>, vector<8x256xbf16>, vector<8x256xf32> -> vector<8x256xf32>
    %121 = arith.addf %112, %120 : vector<8x256xf32>
    %c4_93 = arith.constant 4 : index
    %c0_94 = arith.constant 0 : index
    %c0_95 = arith.constant 0 : index
    %122 = vector.load %arg4[%c4_93, %c0_94, %c0_95] : memref<9x8x8xbf16, #tpu.memory_space<vmem>>, vector<1x8x8xbf16>
    %123 = vector.shape_cast %122 : vector<1x8x8xbf16> to vector<8x8xbf16>
    %cst_96 = arith.constant dense<0.000000e+00> : vector<8x256xf32>
    %124 = tpu.matmul %123, %114, %cst_96 {dimension_numbers = #tpu.dot_dimension_numbers<[1], [0], [0], [1], [0, 0, 1, 1], [], []>} : vector<8x8xbf16>, vector<8x256xbf16>, vector<8x256xf32> -> vector<8x256xf32>
    %125 = arith.addf %121, %124 : vector<8x256xf32>
    %c5_97 = arith.constant 5 : index
    %c0_98 = arith.constant 0 : index
    %c0_99 = arith.constant 0 : index
    %126 = vector.load %arg4[%c5_97, %c0_98, %c0_99] : memref<9x8x8xbf16, #tpu.memory_space<vmem>>, vector<1x8x8xbf16>
    %127 = vector.shape_cast %126 : vector<1x8x8xbf16> to vector<8x8xbf16>
    %cst_100 = arith.constant dense<0.000000e+00> : vector<8x256xf32>
    %128 = tpu.matmul %127, %117, %cst_100 {dimension_numbers = #tpu.dot_dimension_numbers<[1], [0], [0], [1], [0, 0, 1, 1], [], []>} : vector<8x8xbf16>, vector<8x256xbf16>, vector<8x256xf32> -> vector<8x256xf32>
    %129 = arith.addf %125, %128 : vector<8x256xf32>
    %c0_101 = arith.constant 0 : index
    %c32_102 = arith.constant 32 : index
    %130 = vector.load %arg7[%c0_101, %c32_102] : memref<8x290xbf16, #tpu.memory_space<vmem>>, vector<8x256xbf16>
    %c0_103 = arith.constant 0 : index
    %c33_104 = arith.constant 33 : index
    %131 = vector.load %arg7[%c0_103, %c33_104] : memref<8x290xbf16, #tpu.memory_space<vmem>>, vector<8x256xbf16>
    %c0_105 = arith.constant 0 : index
    %c34_106 = arith.constant 34 : index
    %132 = vector.load %arg7[%c0_105, %c34_106] : memref<8x290xbf16, #tpu.memory_space<vmem>>, vector<8x256xbf16>
    %133 = arith.select %18, %132, %130 : vector<8x256xi1>, vector<8x256xbf16>
    %134 = arith.select %20, %130, %132 : vector<8x256xi1>, vector<8x256xbf16>
    %c6_107 = arith.constant 6 : index
    %c0_108 = arith.constant 0 : index
    %c0_109 = arith.constant 0 : index
    %135 = vector.load %arg4[%c6_107, %c0_108, %c0_109] : memref<9x8x8xbf16, #tpu.memory_space<vmem>>, vector<1x8x8xbf16>
    %136 = vector.shape_cast %135 : vector<1x8x8xbf16> to vector<8x8xbf16>
    %cst_110 = arith.constant dense<0.000000e+00> : vector<8x256xf32>
    %137 = tpu.matmul %136, %133, %cst_110 {dimension_numbers = #tpu.dot_dimension_numbers<[1], [0], [0], [1], [0, 0, 1, 1], [], []>} : vector<8x8xbf16>, vector<8x256xbf16>, vector<8x256xf32> -> vector<8x256xf32>
    %138 = arith.addf %129, %137 : vector<8x256xf32>
    %c7_111 = arith.constant 7 : index
    %c0_112 = arith.constant 0 : index
    %c0_113 = arith.constant 0 : index
    %139 = vector.load %arg4[%c7_111, %c0_112, %c0_113] : memref<9x8x8xbf16, #tpu.memory_space<vmem>>, vector<1x8x8xbf16>
    %140 = vector.shape_cast %139 : vector<1x8x8xbf16> to vector<8x8xbf16>
    %cst_114 = arith.constant dense<0.000000e+00> : vector<8x256xf32>
    %141 = tpu.matmul %140, %131, %cst_114 {dimension_numbers = #tpu.dot_dimension_numbers<[1], [0], [0], [1], [0, 0, 1, 1], [], []>} : vector<8x8xbf16>, vector<8x256xbf16>, vector<8x256xf32> -> vector<8x256xf32>
    %142 = arith.addf %138, %141 : vector<8x256xf32>
    %c8_115 = arith.constant 8 : index
    %c0_116 = arith.constant 0 : index
    %c0_117 = arith.constant 0 : index
    %143 = vector.load %arg4[%c8_115, %c0_116, %c0_117] : memref<9x8x8xbf16, #tpu.memory_space<vmem>>, vector<1x8x8xbf16>
    %144 = vector.shape_cast %143 : vector<1x8x8xbf16> to vector<8x8xbf16>
    %cst_118 = arith.constant dense<0.000000e+00> : vector<8x256xf32>
    %145 = tpu.matmul %144, %134, %cst_118 {dimension_numbers = #tpu.dot_dimension_numbers<[1], [0], [0], [1], [0, 0, 1, 1], [], []>} : vector<8x8xbf16>, vector<8x256xbf16>, vector<8x256xf32> -> vector<8x256xf32>
    %146 = arith.addf %142, %145 : vector<8x256xf32>
    %c0_119 = arith.constant 0 : index
    %c0_120 = arith.constant 0 : index
    %147 = vector.load %arg5[%c0_119, %c0_120] : memref<8x1xf32, #tpu.memory_space<vmem>>, vector<8x1xf32>
    %148 = vector.broadcast %147 : vector<8x1xf32> to vector<8x256xf32>
    %149 = arith.addf %146, %148 : vector<8x256xf32>
    %150 = arith.addf %149, %25 : vector<8x256xf32>
    %c0_121 = arith.constant 0 : index
    %c0_122 = arith.constant 0 : index
    %151 = vector.load %arg6[%c0_121, %c0_122] : memref<8x256xf32, #tpu.memory_space<vmem>>, vector<8x256xf32>
    tpu.vector_store %arg6[%c0_121, %c0_122], %150 {strides = array<i32>} : memref<8x256xf32, #tpu.memory_space<vmem>>, vector<8x256xf32>,
    return
  }
  func.func @transform_0(%arg0: i32) -> (i32, i32) {
    %c0_i32 = arith.constant 0 : i32
    %c0_i32_0 = arith.constant 0 : i32
    %c0_i32_1 = arith.constant 0 : i32
    return %c0_i32, %c0_i32_0 : i32, i32
  }
  func.func @transform_1(%arg0: i32) -> (i32, i32, i32) {
    %c0_i32 = arith.constant 0 : i32
    %c0_i32_0 = arith.constant 0 : i32
    %c0_i32_1 = arith.constant 0 : i32
    %c0_i32_2 = arith.constant 0 : i32
    return %c0_i32, %c0_i32_0, %c0_i32_1 : i32, i32, i32
  }
  func.func @transform_2(%arg0: i32) -> (i32, i32) {
    %c0_i32 = arith.constant 0 : i32
    %c0_i32_0 = arith.constant 0 : i32
    %c0_i32_1 = arith.constant 0 : i32
    return %c0_i32, %c0_i32_0 : i32, i32
  }
  func.func @transform_3(%arg0: i32) -> (i32, i32, i32) {
    %c0_i32 = arith.constant 0 : i32
    %c0_i32_0 = arith.constant 0 : i32
    %c0_i32_1 = arith.constant 0 : i32
    %c0_i32_2 = arith.constant 0 : i32
    return %c0_i32, %c0_i32_0, %c0_i32_1 : i32, i32, i32
  }
  func.func @transform_4(%arg0: i32) -> (i32, i32) {
    %c0_i32 = arith.constant 0 : i32
    %c0_i32_0 = arith.constant 0 : i32
    %c0_i32_1 = arith.constant 0 : i32
    return %c0_i32, %c0_i32_0 : i32, i32
  }
  func.func @transform_5(%arg0: i32) -> (i32, i32) {
    %c0_i32 = arith.constant 0 : i32
    %c0_i32_0 = arith.constant 0 : i32
    %c0_i32_1 = arith.constant 0 : i32
    return %c0_i32, %c0_i32_0 : i32, i32
  }
}

</mosaic_0001>

<bundles_post_ra>
// kernel: resnet_block22_forward.1
= control target key start
LH: loop header
LB: loop body
LE: loop exit
PB: predicated region body
PF: predicated region fallthrough
CT: control target
= control target key end

     0   :  { %v23_v0 = vlaneseq  ;;  %vm56_vm0 = vcmask 273672   ;;  %v1305_v3 = vmov 0   ;;  %s1306_s22 = smov 17   ;;  %s1307_s23 = smov 49   ;;  %v2018_v10 = vmov 0  ;;  %s1980_s0 = inlined_call_operand.vmem [shape: f32[8,256], index: 0, kind: input, shape index: {}, may-alias: {0,5}]   ;;  %s1981_s1 = inlined_call_operand.vmem [shape: bf16[9,8,8], index: 1, kind: input, shape index: {}]   ;;  %s1982_s2 = inlined_call_operand.vmem [shape: f32[8,1], index: 2, kind: input, shape index: {}]   ;;  %s1983_s4 = inlined_call_operand.vmem [shape: f32[8,1], index: 4, kind: input, shape index: {}]   ;;  %s1984_s3 = inlined_call_operand.vmem [shape: bf16[9,8,8], index: 3, kind: input, shape index: {}]   ;;  %s1985_s5 = inlined_call_operand.vmem [shape: f32[8,256], index: 5, kind: output, shape index: {}, may-alias: {0,5}]  }
   0x1   :  { %v58_v1 = vld [vmem:[%s1980_s0] sm:$0xff]  ;;  %v59_v2 = vld [vmem:[%s1980_s0 + $0x8] sm:$0xff]  ;;  %57 = vst.msk [vmem:[#allocation2 + $0x8] sm:$0xf] %vm56_vm0, %v1305_v3  ;;  %1302 = vset.pattern.permute.xlu0 %v1305_v3  ;;  %s1308_s24 = smov 113   ;;  %s1309_s25 = smov 2   ;;  %v1414_v29 = vunpack.c.l.b16 %v1305_v3  ;;  %v1417_v30 = vunpack.c.h.b16 %v1305_v3 }
   0x2   :  { %v60_v4 = vpack.c.bf16 %v59_v2, %v58_v1  ;;  %v24_v5 = vand.u32 127, %v23_v0  ;;  %s1310_s26 = smov 16   ;;  %s1311_s27 = smov 34   ;;  %vm54_vm7 = vcmask 3072   ;;  %vm69_vm8 = vcmask 1043592  }
   0x3   :  { %55 = vst.msk [vmem:[#allocation2] sm:$0xf] %vm54_vm7, %v1305_v3  ;;  %vm70_vm9 = vcmask 1047556   ;;  %vm1994_vm10 = vcmask 138240   ;;  %vm1990_vm11 = vcmask 134144   ;;  %vm1988_vm12 = vcmask 265352  }
   0x4   :  { %62 = vrot.lane.b32.xlu0 %v60_v4, %s1306_s22  ;;  %80 = vrot.lane.b32.xlu1 %v60_v4, %s1307_s23  ;;  %v25_v6 = vadd.s32 128, %v24_v5  ;;  %v30_v7 = vand.u32 15, %v24_v5  ;;  %vm1376_vm13 = vmor %vm70_vm9, %vm69_vm8  ;;  %vm1989_vm14 = vcmask 134152   ;;  %s1312_s28 = smov 127   ;;  %s1313_s29 = smov 126   ;;  %vm1993_vm15 = vcmask 15360  }
   0x5   :  { %s1314_s30 = smov 18   ;;  %vm285_vm7 = vcmask 146432   ;;  %v2030_v59 = vmov 0  ;;  %v2032_v60 = vmov 0  ;;  %v2034_v61 = vmov 0  ;;  %s1315_s6 = smov 32  }
   0x6   :  { %v37_v8 = vand.u32 15, %v25_v6  ;;  %vm50_vm1 = vcmp.eq.s32.totalorder %v30_v7, 0  ;;  %vm52_vm4 = vcmp.eq.s32.totalorder %v30_v7, 15  ;;  %v2036_v62 = vmov 0  ;;  %s1316_s7 = smov 110   ;;  %s1317_s8 = smov 111  }
   0x7   :  { %s1318_s9 = smov 112   ;;  %s1319_s10 = smov 94  }
   0x8   :  { %vm51_vm2 = vcmp.eq.s32.totalorder %v37_v8, 0  ;;  %vm53_vm5 = vcmp.eq.s32.totalorder %v37_v8, 15  ;;  %s1320_s11 = smov 95   ;;  %s1321_s14 = smov 96  }
   0x9   :  { %vm88_vm3 = vmpackc.low %vm51_vm2, %vm50_vm1 }
   0xa   :  { %v89_v9 = vsel %vm88_vm3, 65537, %v1305_v3  ;;  %vm1365_vm6 = vmpackc.low %vm53_vm5, %vm52_vm4 }
   0xb   :  { %v2019_v10 = vsel %vm1365_vm6, 4294967295, %v2018_v10  ;;  %v1372_v11 = vsel %vm1365_vm6, 65537, %v1305_v3 }
   0xc   :  { %75 = vrot.lane.b32.xlu0 %v60_v4, %s1308_s24  ;;  %90 = vrot.lane.b32.xlu1 %v89_v9, %s1309_s25 }
  0x14   :  { %308 = vrot.lane.b32.xlu1 %v1372_v11, %s1310_s26 }
  0x1c   :  { %490 = vrot.lane.b32.xlu1 %v89_v9, %s1311_s27 }
  0x76   :  { %v63_v12 = vpop.permute.xlu0 %62  ;;  %v81_v13 = vpop.permute.xlu1 %80 }
  0x77   :  { %v64_v14 = vrot.slane %v63_v12, 4  ;;  %v82_v15 = vrot.slane %v81_v13, 4 }
  0x79   :  { %v66_v17 = vsel %vm1994_vm10, %v64_v14, %v63_v12  ;;  %74 = vst.msk [vmem:[#allocation2 + $0x8] sm:$0xf] %vm1990_vm11, %v64_v14  ;;  %vm493_vm11 = vcmask 277504  }
  0x7a   :  { %85 = vst.msk [vmem:[#allocation2 + $0x8] sm:$0xf] %vm1988_vm12, %v82_v15 }
  0x7b   :  { %72 = vst.msk [vmem:[#allocation2] sm:$0xff] %vm1376_vm13, %v66_v17 }
  0x7e   :  { %v76_v18 = vpop.permute.xlu0 %75  ;;  %v91_v27 = vpop.permute.xlu1 %90 }
  0x7f   :  { %79 = vst.msk [vmem:[#allocation2] sm:$0xf] %vm1989_vm14, %v76_v18  ;;  %v92_v28 = vrot.slane %v91_v27, 4 }
  0x81   :  { %v1386_v19 = vld [vmem:[#allocation2 + $0x8] sm:$0xf]  ;;  %v94_v31 = vsel %vm1993_vm15, %v92_v28, %v91_v27  ;;  %v102_v32 = vunpack.c.l.b16 %v92_v28  ;;  %v103_v33 = vunpack.c.h.b16 %v92_v28 }
  0x82   :  { %301 = vrot.lane.b32.xlu0 %v1386_v19, %s1309_s25  ;;  %v137_v20 = vunpack.c.l.b16 %v1386_v19  ;;  %v95_v34 = vunpack.c.l.b16 %v94_v31  ;;  %v96_v35 = vunpack.c.h.b16 %v94_v31 }
  0x83   :  { %vm1421_vm0 = vcmp.ne.s32.totalorder %v102_v32, %v1414_v29  ;;  %vm1426_vm1 = vcmp.ne.s32.totalorder %v103_v33, %v1417_v30  ;;  %v2042_v32 = vmov 0  ;;  %v2044_v33 = vmov 0 }
  0x84   :  { %v1391_v21 = vpack.c.b16 %v137_v20, %v137_v20  ;;  %vm1431_vm2 = vcmp.ne.s32.totalorder %v95_v34, %v1414_v29  ;;  %vm1436_vm3 = vcmp.ne.s32.totalorder %v96_v35, %v1417_v30  ;;  %vm1987_vm4 = vmpackc.low %vm1426_vm1, %vm1421_vm0 }
  0x85   :  { %vm1986_vm5 = vmpackc.low %vm1436_vm3, %vm1431_vm2 }
  0x86   :  { %v1393_v22 = vld [vmem:[#allocation2] sm:$0xff]  ;;  %145 = vrot.lane.b32.xlu1 %v1391_v21, %s1312_s28  ;;  %v309_v48 = vpop.permute.xlu1 %308 }
  0x87   :  { %110 = vrot.lane.b32.xlu2 %v1393_v22, %s1309_s25  ;;  %v136_v23 = vunpack.c.h.b16 %v1393_v22  ;;  %v135_v25 = vunpack.c.l.b16 %v1393_v22  ;;  %v310_v63 = vrot.slane %v309_v48, 4 }
  0x89   :  { %v1402_v24 = vpack.c.b16 %v136_v23, %v136_v23  ;;  %v1409_v26 = vpack.c.b16 %v135_v25, %v135_v25  ;;  %v320_v14 = vunpack.c.l.b16 %v310_v63  ;;  %v321_v15 = vunpack.c.h.b16 %v310_v63 }
  0x8a   :  { %122 = vrot.lane.b32.xlu0 %v1386_v19, %s1313_s29  ;;  %v2038_v23 = vmov 0  ;;  %v2040_v25 = vmov 0 }
  0x8e   :  { %v491_v0 = vpop.permute.xlu1 %490 }
  0x8f   :  { %282 = vrot.lane.b32.xlu2 %v89_v9, %s1314_s30  ;;  %v492_v5 = vrot.slane %v491_v0, 4 }
  0x91   :  { %v494_v18 = vsel %vm493_vm11, %v492_v5, %v491_v0  ;;  %vm1532_vm11 = vcmp.ne.s32.totalorder %v321_v15, %v1417_v30 }
  0x92   :  { %143 = vrot.lane.b32.xlu0 %v1402_v24, %s1312_s28  ;;  %v495_v28 = vunpack.c.l.b16 %v494_v18  ;;  %v496_v31 = vunpack.c.h.b16 %v494_v18  ;;  %v2045_v33 = vsel %vm1532_vm11, 4294967295, %v2044_v33 }
  0x94   :  { %vm1557_vm10 = vcmp.ne.s32.totalorder %v496_v31, %v1417_v30  ;;  %v1233_v31 = vld [vmem:[%s1981_s1 + $0x4] sm:$0xf] }
  0x97   :  { %120 = vrot.lane.b32.xlu2 %v1393_v22, %s1313_s29 }
  0x9f   :  { %141 = vrot.lane.b32.xlu2 %v1409_v26, %s1312_s28 }
  0xe1   :  { %v111_v40 = vpop.permute.xlu2 %110 }
  0xe2   :  { %v112_v41 = vrot.slane %v111_v40, 4 }
  0xe4   :  { %v1449_v42 = vsel %vm1993_vm15, %v112_v41, %v111_v40  ;;  %v117_v43 = vsel %vm1987_vm4, %v1386_v19, %v112_v41 }
  0xe5   :  { %v116_v44 = vsel %vm1986_vm5, %v1393_v22, %v1449_v42  ;;  %v191_v45 = vunpack.c.l.b16 %v117_v43  ;;  %vm311_vm5 = vcmask 130048  }
  0xe6   :  { %v190_v46 = vunpack.c.h.b16 %v116_v44  ;;  %v189_v47 = vunpack.c.l.b16 %v116_v44  ;;  %v312_v4 = vsel %vm311_vm5, %v310_v63, %v309_v48 }
  0xe7   :  { %v194_v49 = vpack.c.b16 %v191_v45, %v191_v45  ;;  %v313_v12 = vunpack.c.l.b16 %v312_v4  ;;  %v314_v13 = vunpack.c.h.b16 %v312_v4  ;;  %v503_v45 = vunpack.c.h.b16 %v492_v5 }
  0xe8   :  { %v193_v50 = vpack.c.b16 %v190_v46, %v190_v46  ;;  %v192_v51 = vpack.c.b16 %v189_v47, %v189_v47 }
  0xe9   :  { %199 = vrot.lane.b32.xlu1 %v194_v49, %s1313_s29  ;;  %v283_v52 = vpop.permute.xlu2 %282  ;;  %vm1516_vm5 = vcmp.ne.s32.totalorder %v313_v12, %v1414_v29 }
  0xea   :  { %v284_v53 = vrot.slane %v283_v52, 4  ;;  %197 = vrot.lane.b32.xlu0 %v193_v50, %s1313_s29  ;;  %195 = vrot.lane.b32.xlu2 %v192_v51, %s1313_s29  ;;  %v2039_v23 = vsel %vm1516_vm5, 4294967295, %v2038_v23 }
  0xec   :  { %v286_v54 = vsel %vm285_vm7, %v284_v53, %v283_v52  ;;  %v294_v55 = vunpack.c.l.b16 %v284_v53  ;;  %v295_v56 = vunpack.c.h.b16 %v284_v53 }
  0xed   :  { %v287_v57 = vunpack.c.l.b16 %v286_v54  ;;  %v288_v58 = vunpack.c.h.b16 %v286_v54 }
  0xee   :  { %vm1482_vm4 = vcmp.ne.s32.totalorder %v294_v55, %v1414_v29  ;;  %vm1487_vm12 = vcmp.ne.s32.totalorder %v295_v56, %v1417_v30  ;;  %v2054_v56 = vmov 0 }
  0xef   :  { %vm1468_vm8 = vcmp.ne.s32.totalorder %v287_v57, %v1414_v29  ;;  %vm1473_vm9 = vcmp.ne.s32.totalorder %v288_v58, %v1417_v30  ;;  %v2035_v61 = vsel %vm1482_vm4, 4294967295, %v2034_v61  ;;  %v2037_v62 = vsel %vm1487_vm12, 4294967295, %v2036_v62  ;;  %vm1992_vm14 = vmpackc.low %vm1487_vm12, %vm1482_vm4 }
  0xf0   :  { %v2031_v59 = vsel %vm1468_vm8, 4294967295, %v2030_v59  ;;  %v2033_v60 = vsel %vm1473_vm9, 4294967295, %v2032_v60  ;;  %vm1991_vm7 = vmpackc.low %vm1473_vm9, %vm1468_vm8  ;;  %vm2050_vm4 = vcmask 1043456   ;;  %vm2051_vm12 = vcmask 1031168  }
  0xf1   :  { %v305_v1 = vsel %vm1991_vm7, %v1393_v22, %v1449_v42  ;;  %vm1521_vm7 = vcmp.ne.s32.totalorder %v314_v13, %v1417_v30  ;;  %v121_v27 = vpop.permute.xlu2 %120 }
  0xf2   :  { %511 = vrot.lane.b32.xlu2 %v1372_v11, %s1315_s6  ;;  %v335_v2 = vunpack.c.h.b16 %v305_v1  ;;  %v334_v3 = vunpack.c.l.b16 %v305_v1  ;;  %v2041_v25 = vsel %vm1521_vm7, 4294967295, %v2040_v25  ;;  %v124_v35 = vrot.slane %v121_v27, 4  ;;  %vm2053_vm9 = vmpackc.low %vm1521_vm7, %vm1516_vm5 }
  0xf4   :  { %v302_v6 = vpop.permute.xlu0 %301  ;;  %v338_v7 = vpack.c.b16 %v335_v2, %v335_v2  ;;  %v337_v8 = vpack.c.b16 %v334_v3, %v334_v3 }
  0xf5   :  { %v1504_v9 = vsel %vm1993_vm15, %v112_v41, %v302_v6  ;;  %v502_v41 = vunpack.c.l.b16 %v492_v5  ;;  %vm1552_vm15 = vcmp.ne.s32.totalorder %v495_v28, %v1414_v29 }
  0xf6   :  { %v306_v11 = vsel %vm1992_vm14, %v1386_v19, %v1504_v9  ;;  %342 = vrot.lane.b32.xlu1 %v338_v7, %s1316_s7  ;;  %340 = vrot.lane.b32.xlu0 %v337_v8, %s1316_s7  ;;  %vm1527_vm14 = vcmp.ne.s32.totalorder %v320_v14, %v1414_v29 }
  0xf7   :  { %v336_v17 = vunpack.c.l.b16 %v306_v11  ;;  %v2043_v32 = vsel %vm1527_vm14, 4294967295, %v2042_v32  ;;  %vm2052_vm8 = vmpackc.low %vm1532_vm11, %vm1527_vm14  ;;  %vm2058_vm14 = vcmask 1043456  }
  0xf8   :  { %v146_v51 = vpop.permute.xlu1 %145  ;;  %vm2059_vm11 = vmmov %vm2058_vm14 }
  0xf9   :  { %v339_v20 = vpack.c.b16 %v336_v17, %v336_v17  ;;  %v142_v58 = vpop.permute.xlu2 %141  ;;  %vm2060_vm5 = vmmov %vm2059_vm11 }
  0xfa   :  { %vm2061_vm7 = vmmov %vm2060_vm5 }
  0xfb   :  { %344 = vrot.lane.b32.xlu2 %v339_v20, %s1316_s7 }
  0xfc   :  { %v1536_v34 = vpop.permute.xlu0 %122 }
  0xfd   :  { %v125_v40 = vrot.slane %v1536_v34, 4  ;;  %v329_v48 = vsel %vm2052_vm8, %v1386_v19, %v1536_v34  ;;  %vm1588_vm8 = vcmp.ne.s32.totalorder %v502_v41, %v1414_v29 }
  0xfe   :  { %390 = vrot.lane.b32.xlu1 %v1402_v24, %s1317_s8  ;;  %388 = vrot.lane.b32.xlu0 %v1409_v26, %s1317_s8  ;;  %v2055_v56 = vsel %vm1588_vm8, 4294967295, %v2054_v56  ;;  %v440_v5 = vunpack.c.l.b16 %v329_v48  ;;  %v2064_v48 = vmov 0 }
  0xff   :  { %v127_v46 = vsel %vm2050_vm4, %v124_v35, %v125_v40  ;;  %vm2005_vm4 = vcmask 1039360  }
 0x100   :  { %v1563_v47 = vsel %vm2051_vm12, %v121_v27, %v127_v46  ;;  %vm2003_vm12 = vmpackc.low %vm1557_vm10, %vm1552_vm15  ;;  %v443_v15 = vpack.c.b16 %v440_v5, %v440_v5 }
 0x101   :  { %v328_v49 = vsel %vm2053_vm9, %v1393_v22, %v1563_v47  ;;  %v131_v50 = vsel %vm1365_vm6, %v1393_v22, %v1563_v47  ;;  %vm1593_vm9 = vcmp.ne.s32.totalorder %v503_v45, %v1417_v30  ;;  %v509_v4 = vsel %vm2003_vm12, %v1393_v22, %v1449_v42 }
 0x102   :  { %v439_v52 = vunpack.c.h.b16 %v328_v49  ;;  %v438_v53 = vunpack.c.l.b16 %v328_v49  ;;  %v241_v54 = vunpack.c.l.b16 %v131_v50  ;;  %v242_v55 = vunpack.c.h.b16 %v131_v50  ;;  %vm2004_vm12 = vmpackc.low %vm1593_vm9, %vm1588_vm8 }
 0x103   :  { %392 = vrot.lane.b32.xlu2 %v1391_v21, %s1317_s8  ;;  %v537_v42 = vunpack.c.h.b16 %v509_v4  ;;  %v536_v14 = vunpack.c.l.b16 %v509_v4  ;;  %v510_v17 = vsel %vm2004_vm12, %v1386_v19, %v1504_v9  ;;  %v2066_v49 = vmov 0 }
 0x104   :  { %v144_v63 = vpop.permute.xlu0 %143  ;;  %v442_v0 = vpack.c.b16 %v439_v52, %v439_v52  ;;  %v441_v1 = vpack.c.b16 %v438_v53, %v438_v53  ;;  %v243_v2 = vpack.c.b16 %v241_v54, %v241_v54  ;;  %v244_v3 = vpack.c.b16 %v242_v55, %v242_v55 }
 0x105   :  { %v148_v6 = vsel %vm2005_vm4, %v142_v58, %v144_v63  ;;  %v149_v7 = vsel %vm2005_vm4, %v144_v63, %v146_v51  ;;  %v540_v18 = vpack.c.b16 %v537_v42, %v537_v42  ;;  %v539_v20 = vpack.c.b16 %v536_v14, %v536_v14 }
 0x106   :  { %446 = vrot.lane.b32.xlu1 %v442_v0, %s1318_s9  ;;  %444 = vrot.lane.b32.xlu0 %v441_v1, %s1318_s9  ;;  %v156_v8 = vsel %vm2058_vm14, %v148_v6, 0  ;;  %v159_v12 = vsel %vm2059_vm11, %v149_v7, 0  ;;  %v249_v13 = vsel %vm2060_vm5, %v243_v2, 0  ;;  %v252_v11 = vsel %vm2061_vm7, %v244_v3, 0  ;;  %v132_v3 = vld [vmem:[%s1981_s1] sm:$0xf] }
 0x107   :  { %168 = vmatpush.bf16.msra.mxu0 %v156_v8  ;;  %181 = vmatpush.bf16.msra.mxu1 %v159_v12  ;;  %v538_v27 = vunpack.c.l.b16 %v510_v17  ;;  %vm2006_vm14 = vcmask 64512   ;;  %vm514_vm7 = vcmask 261120   ;;  %v2068_v50 = vmov 0 }
 0x109   :  { %v541_v28 = vpack.c.b16 %v538_v27, %v538_v27 }
 0x10a   :  { %1234 = vmatmul.msk.bf16.vlgmr.msra.gmra.mxu0 %vm2006_vm14, %v1233_v31  ;;  %1235 = vmatmul.msk.bf16.vlgmr.msra.gmra.mxu1 %vm2006_vm14, %v1233_v31 }
 0x10b   :  { %261 = vmatpush.bf16.msrb.mxu0 %v249_v13  ;;  %274 = vmatpush.bf16.msrb.mxu1 %v252_v11  ;;  %v1241_v11 = vld [vmem:[%s1981_s1 + $0xc] sm:$0xf] }
 0x10c   :  { %448 = vrot.lane.b32.xlu2 %v443_v15, %s1318_s9 }
 0x10e   :  { %544 = vrot.lane.b32.xlu1 %v540_v18, %s1319_s10  ;;  %542 = vrot.lane.b32.xlu0 %v539_v20, %s1319_s10 }
 0x114   :  { %546 = vrot.lane.b32.xlu2 %v541_v28, %s1319_s10  ;;  %v1244_v28 = vld [vmem:[%s1981_s1 + $0x10] sm:$0xf] }
 0x116   :  { %592 = vrot.lane.b32.xlu1 %v1402_v24, %s1320_s11  ;;  %590 = vrot.lane.b32.xlu0 %v1409_v26, %s1320_s11 }
 0x11c   :  { %594 = vrot.lane.b32.xlu2 %v1391_v21, %s1320_s11  ;;  %v2062_v21 = vmov 0 }
 0x144   :  { %v196_v9 = vpop.permute.xlu2 %195 }
 0x14c   :  { %v512_v35 = vpop.permute.xlu2 %511 }
 0x14d   :  { %v513_v40 = vrot.slane %v512_v35, 4 }
 0x14f   :  { %v515_v24 = vsel %vm514_vm7, %v513_v40, %v512_v35  ;;  %v523_v41 = vunpack.c.l.b16 %v513_v40  ;;  %v524_v45 = vunpack.c.h.b16 %v513_v40 }
 0x150   :  { %v516_v26 = vunpack.c.l.b16 %v515_v24  ;;  %v517_v46 = vunpack.c.h.b16 %v515_v24 }
 0x151   :  { %vm1641_vm5 = vcmp.ne.s32.totalorder %v523_v41, %v1414_v29  ;;  %vm1646_vm11 = vcmp.ne.s32.totalorder %v524_v45, %v1417_v30 }
 0x152   :  { %v2063_v21 = vsel %vm1641_vm5, 4294967295, %v2062_v21  ;;  %v2065_v48 = vsel %vm1646_vm11, 4294967295, %v2064_v48  ;;  %vm1651_vm12 = vcmp.ne.s32.totalorder %v516_v26, %v1414_v29  ;;  %vm1656_vm7 = vcmp.ne.s32.totalorder %v517_v46, %v1417_v30  ;;  %vm2007_vm4 = vmpackc.low %vm1646_vm11, %vm1641_vm5  ;;  %v1247_v26 = vld [vmem:[%s1981_s1 + $0x14] sm:$0xf] }
 0x153   :  { %v2067_v49 = vsel %vm1651_vm12, 4294967295, %v2066_v49  ;;  %v2069_v50 = vsel %vm1656_vm7, 4294967295, %v2068_v50  ;;  %vm2008_vm14 = vmpackc.low %vm1656_vm7, %vm1651_vm12  ;;  %v531_v29 = vsel %vm2007_vm4, %v1386_v19, %v1536_v34  ;;  %v1238_v19 = vld [vmem:[%s1981_s1 + $0x8] sm:$0xf]  ;;  %vm2070_vm4 = vcmask 64512  }
 0x154   :  { %v642_v30 = vunpack.c.l.b16 %v531_v29  ;;  %v530_v51 = vsel %vm2008_vm14, %v1393_v22, %v1563_v47  ;;  %1239 = vmatmul.msk.bf16.vlgmr.msrb.gmra.mxu0 %vm2070_vm4, %v1238_v19  ;;  %vm2071_vm14 = vmmov %vm2070_vm4  ;;  %vm2072_vm5 = vcmask 1031168   ;;  %vm2074_vm12 = vcmask 1043456  }
 0x155   :  { %v641_v52 = vunpack.c.h.b16 %v530_v51  ;;  %v640_v53 = vunpack.c.l.b16 %v530_v51  ;;  %1240 = vmatmul.msk.bf16.vlgmr.msrb.gmra.mxu1 %vm2071_vm14, %v1238_v19  ;;  %vm2073_vm11 = vmmov %vm2072_vm5  ;;  %v345_v2 = vpop.permute.xlu2 %344  ;;  %vm2014_vm14 = vcmask 900096  }
 0x156   :  { %v645_v54 = vpack.c.b16 %v642_v30, %v642_v30  ;;  %vm2075_vm7 = vmmov %vm2074_vm12 }
 0x157   :  { %v644_v55 = vpack.c.b16 %v641_v52, %v641_v52  ;;  %v643_v58 = vpack.c.b16 %v640_v53, %v640_v53  ;;  %vm2076_vm6 = vmmov %vm2070_vm4 }
 0x158   :  { %650 = vrot.lane.b32.xlu2 %v645_v54, %s1321_s14  ;;  %vm2083_vm8 = vmmov %vm2070_vm4  ;;  %v1250_v54 = vld [vmem:[%s1981_s1 + $0x18] sm:$0xf] }
 0x159   :  { %648 = vrot.lane.b32.xlu1 %v644_v55, %s1321_s14  ;;  %646 = vrot.lane.b32.xlu0 %v643_v58, %s1321_s14 }
 0x15b   :  { %v200_v34 = vpop.permute.xlu1 %199 }
 0x15c   :  { %v198_v22 = vpop.permute.xlu0 %197 }
 0x15d   :  { %v201_v47 = vsel %vm2072_vm5, %v196_v9, %v198_v22  ;;  %v202_v63 = vsel %vm2073_vm11, %v198_v22, %v200_v34  ;;  %v393_v6 = vpop.permute.xlu2 %392  ;;  %vm2078_vm5 = vmmov %vm2075_vm7  ;;  %vm2017_vm11 = vcmask 908288  }
 0x15e   :  { %v207_v0 = vsel %vm2074_vm12, %v201_v47, 0  ;;  %v210_v1 = vsel %vm2075_vm7, %v202_v63, 0  ;;  %vm2077_vm12 = vmmov %vm2075_vm7 }
 0x15f   :  { %219 = vmatpush.bf16.msra.mxu2 %v207_v0  ;;  %232 = vmatpush.bf16.msra.mxu3 %v210_v1  ;;  %vm2080_vm7 = vmmov %vm2078_vm5  ;;  %v1253_v0 = vld [vmem:[%s1981_s1 + $0x1c] sm:$0xf]  ;;  %v692_v1 = vld [vmem:[%s1982_s2] sm:$0xff] }
 0x161   :  { %695 = vperm.xlu0 %1302, %v692_v1  }
 0x162   :  { %1236 = vmatmul.msk.bf16.vlgmr.msra.gmra.mxu2 %vm2076_vm6, %v132_v3  ;;  %1237 = vmatmul.msk.bf16.vlgmr.msra.gmra.mxu3 %vm2070_vm4, %v132_v3  ;;  %vm2079_vm6 = vmmov %vm2078_vm5 }
 0x166   :  { %v449_v27 = vpop.permute.xlu2 %448 }
 0x168   :  { %v343_v4 = vpop.permute.xlu1 %342  ;;  %v341_v5 = vpop.permute.xlu0 %340 }
 0x169   :  { %v347_v7 = vsel %vm2014_vm14, %v341_v5, %v343_v4  ;;  %v348_v8 = vsel %vm2014_vm14, %v343_v4, %v345_v2  ;;  %vm2082_vm14 = vmmov %vm2070_vm4 }
 0x16a   :  { %v353_v12 = vsel %vm2077_vm12, %v347_v7, 0  ;;  %v356_v13 = vsel %vm2078_vm5, %v348_v8, 0  ;;  %vm2081_vm12 = vmmov %vm2070_vm4  ;;  %vm2016_vm5 = vcmask 916480  }
 0x16b   :  { %365 = vmatpush.bf16.msrb.mxu2 %v353_v12  ;;  %378 = vmatpush.bf16.msrb.mxu3 %v356_v13 }
 0x16e   :  { %v547_v45 = vpop.permute.xlu2 %546 }
 0x170   :  { %v391_v42 = vpop.permute.xlu1 %390  ;;  %v389_v14 = vpop.permute.xlu0 %388 }
 0x171   :  { %v396_v15 = vsel %vm2017_vm11, %v391_v42, %v393_v6  ;;  %v395_v17 = vsel %vm2017_vm11, %v389_v14, %v391_v42 }
 0x172   :  { %v404_v18 = vsel %vm2079_vm6, %v396_v15, 0  ;;  %v401_v20 = vsel %vm2080_vm7, %v395_v17, 0  ;;  %1242 = vmatmul.msk.bf16.vlgmr.msrb.gmra.mxu2 %vm2070_vm4, %v1241_v11  ;;  %1243 = vmatmul.msk.bf16.vlgmr.msrb.gmra.mxu3 %vm2081_vm12, %v1241_v11  ;;  %vm2084_vm7 = vmmov %vm2079_vm6  ;;  %vm548_vm4 = vcmask 769024   ;;  %v1256_v11 = vld [vmem:[%s1981_s1 + $0x20] sm:$0xf] }
 0x173   :  { %413 = vmatpush.bf16.msra.mxu0 %v401_v20  ;;  %426 = vmatpush.bf16.msra.mxu1 %v404_v18 }
 0x176   :  { %1245 = vmatmul.msk.bf16.vlgmr.msra.gmra.mxu0 %vm2082_vm14, %v1244_v28  ;;  %1246 = vmatmul.msk.bf16.vlgmr.msra.gmra.mxu1 %vm2083_vm8, %v1244_v28  ;;  %vm2085_vm8 = vmmov %vm2079_vm6  ;;  %v595_v55 = vpop.permute.xlu2 %594 }
 0x177   :  { %vm2086_vm14 = vmmov %vm2079_vm6 }
 0x178   :  { %v447_v9 = vpop.permute.xlu1 %446  ;;  %v445_v31 = vpop.permute.xlu0 %444 }
 0x179   :  { %v452_v35 = vsel %vm2016_vm5, %v447_v9, %v449_v27  ;;  %v451_v40 = vsel %vm2016_vm5, %v445_v31, %v447_v9 }
 0x17a   :  { %v460_v24 = vsel %vm2079_vm6, %v452_v35, 0  ;;  %v457_v41 = vsel %vm2084_vm7, %v451_v40, 0  ;;  %vm2087_vm6 = vmmov %vm2081_vm12  ;;  %vm596_vm7 = vcmask 777216  }
 0x17b   :  { %469 = vmatpush.bf16.msra.mxu2 %v457_v41  ;;  %482 = vmatpush.bf16.msra.mxu3 %v460_v24  ;;  %vm2088_vm5 = vmmov %vm2087_vm6 }
 0x17c   :  { %vm2089_vm11 = vmmov %vm2088_vm5 }
 0x180   :  { %v545_v46 = vpop.permute.xlu1 %544  ;;  %v543_v29 = vpop.permute.xlu0 %542 }
 0x181   :  { %v550_v30 = vsel %vm548_vm4, %v545_v46, %v547_v45  ;;  %v549_v51 = vsel %vm548_vm4, %v543_v29, %v545_v46 }
 0x182   :  { %v558_v52 = vsel %vm2085_vm8, %v550_v30, 0  ;;  %v555_v53 = vsel %vm2086_vm14, %v549_v51, 0  ;;  %1248 = vmatmul.msk.bf16.vlgmr.msra.gmra.mxu2 %vm2081_vm12, %v1247_v26  ;;  %1249 = vmatmul.msk.bf16.vlgmr.msra.gmra.mxu3 %vm2087_vm6, %v1247_v26  ;;  %vm2090_vm14 = vmmov %vm2085_vm8  ;;  %vm652_vm12 = vcmask 785408  }
 0x183   :  { %567 = vmatpush.bf16.msrb.mxu0 %v555_v53  ;;  %580 = vmatpush.bf16.msrb.mxu1 %v558_v52  ;;  %vm2092_vm6 = vmmov %vm2085_vm8 }
 0x186   :  { %1251 = vmatmul.msk.bf16.vlgmr.msrb.gmra.mxu0 %vm2088_vm5, %v1250_v54  ;;  %1252 = vmatmul.msk.bf16.vlgmr.msrb.gmra.mxu1 %vm2089_vm11, %v1250_v54  ;;  %vm2091_vm11 = vmmov %vm2088_vm5 }
 0x187   :  { %v170_v2 = vpop.f32.mrf.mxu0  ;;  %v183_v3 = vpop.f32.mrf.mxu1 }
 0x188   :  { %v593_v58 = vpop.permute.xlu1 %592  ;;  %v591_v19 = vpop.permute.xlu0 %590 }
 0x189   :  { %v598_v34 = vsel %vm596_vm7, %v593_v58, %v595_v55  ;;  %v597_v22 = vsel %vm596_vm7, %v591_v19, %v593_v58 }
 0x18a   :  { %v606_v47 = vsel %vm2085_vm8, %v598_v34, 0  ;;  %v603_v63 = vsel %vm2090_vm14, %v597_v22, 0  ;;  %vm2093_vm8 = vmmov %vm2092_vm6 }
 0x18b   :  { %615 = vmatpush.bf16.msrb.mxu2 %v603_v63  ;;  %628 = vmatpush.bf16.msrb.mxu3 %v606_v47  ;;  %vm2094_vm14 = vmmov %vm2088_vm5 }
 0x18f   :  { %v172_v42 = vpop.f32.mrf.mxu0  ;;  %v185_v14 = vpop.f32.mrf.mxu1 }
 0x192   :  { %1254 = vmatmul.msk.bf16.vlgmr.msrb.gmra.mxu2 %vm2088_vm5, %v1253_v0  ;;  %1255 = vmatmul.msk.bf16.vlgmr.msrb.gmra.mxu3 %vm2091_vm11, %v1253_v0  ;;  %vm2095_vm11 = vcmask 138240  }
 0x1b2   :  { %v651_v4 = vpop.permute.xlu2 %650 }
 0x1cb   :  { %v649_v5 = vpop.permute.xlu1 %648  ;;  %v647_v6 = vpop.permute.xlu0 %646 }
 0x1cc   :  { %v654_v7 = vsel %vm652_vm12, %v649_v5, %v651_v4  ;;  %v653_v8 = vsel %vm652_vm12, %v647_v6, %v649_v5 }
 0x1cd   :  { %v662_v12 = vsel %vm2092_vm6, %v654_v7, 0  ;;  %v659_v13 = vsel %vm2093_vm8, %v653_v8, 0  ;;  %vm2096_vm6 = vcmask 134144   ;;  %vm2097_vm8 = vcmask 134152  }
 0x1ce   :  { %671 = vmatpush.bf16.msra.mxu0 %v659_v13  ;;  %684 = vmatpush.bf16.msra.mxu1 %v662_v12 }
 0x1d1   :  { %1257 = vmatmul.msk.bf16.vlgmr.msra.gmra.mxu0 %vm2094_vm14, %v1256_v11  ;;  %1258 = vmatmul.msk.bf16.vlgmr.msra.gmra.mxu1 %vm2088_vm5, %v1256_v11  ;;  %v263_v15 = vpop.f32.mrf.mxu0  ;;  %vm2098_vm14 = vcmask 265352   ;;  %vm2100_vm5 = vmpackc.low %vm1426_vm1, %vm1421_vm0  ;;  %vm2102_vm0 = vnez %v2033_v60  ;;  %vm2103_vm1 = vnez %v2031_v59 }
 0x1d2   :  { %v276_v17 = vpop.f32.mrf.mxu1 }
 0x1d9   :  { %v265_v18 = vpop.f32.mrf.mxu0 }
 0x1da   :  { %v278_v20 = vpop.f32.mrf.mxu1 }
 0x1e5   :  { %v221_v27 = vpop.f32.mrf.mxu2  ;;  %v234_v28 = vpop.f32.mrf.mxu3 }
 0x1e6   :  { %v222_v9 = vadd.f32 %v221_v27, %v170_v2  ;;  %v235_v31 = vadd.f32 %v234_v28, %v183_v3 }
 0x1e8   :  { %v280_v35 = vadd.f32 %v263_v15, %v222_v9  ;;  %v281_v40 = vadd.f32 %v276_v17, %v235_v31  ;;  %v696_v15 = vpop.permute.xlu0 %695 }
 0x1ed   :  { %v223_v24 = vpop.f32.mrf.mxu2  ;;  %v236_v41 = vpop.f32.mrf.mxu3 }
 0x1f3   :  { %v415_v45 = vpop.f32.mrf.mxu0  ;;  %v428_v26 = vpop.f32.mrf.mxu1 }
 0x1f5   :  { %v367_v46 = vpop.f32.mrf.mxu2  ;;  %v380_v29 = vpop.f32.mrf.mxu3 }
 0x1f6   :  { %v384_v30 = vadd.f32 %v367_v46, %v280_v35  ;;  %v385_v51 = vadd.f32 %v380_v29, %v281_v40 }
 0x1f8   :  { %v432_v52 = vadd.f32 %v415_v45, %v384_v30  ;;  %v433_v53 = vadd.f32 %v428_v26, %v385_v51 }
 0x1fb   :  { %v417_v54 = vpop.f32.mrf.mxu0  ;;  %v430_v55 = vpop.f32.mrf.mxu1 }
 0x1fd   :  { %v369_v58 = vpop.f32.mrf.mxu2  ;;  %v382_v19 = vpop.f32.mrf.mxu3 }
 0x203   :  { %v569_v34 = vpop.f32.mrf.mxu0  ;;  %v582_v22 = vpop.f32.mrf.mxu1 }
 0x205   :  { %v471_v47 = vpop.f32.mrf.mxu2  ;;  %v484_v63 = vpop.f32.mrf.mxu3 }
 0x206   :  { %v488_v0 = vadd.f32 %v471_v47, %v432_v52  ;;  %v489_v1 = vadd.f32 %v484_v63, %v433_v53 }
 0x208   :  { %v586_v2 = vadd.f32 %v569_v34, %v488_v0  ;;  %v587_v3 = vadd.f32 %v582_v22, %v489_v1 }
 0x20b   :  { %v571_v4 = vpop.f32.mrf.mxu0  ;;  %v584_v5 = vpop.f32.mrf.mxu1 }
 0x20d   :  { %v473_v6 = vpop.f32.mrf.mxu2  ;;  %v486_v7 = vpop.f32.mrf.mxu3 }
 0x215   :  { %v617_v8 = vpop.f32.mrf.mxu2  ;;  %v630_v12 = vpop.f32.mrf.mxu3 }
 0x216   :  { %v634_v42 = vadd.f32 %v617_v8, %v586_v2  ;;  %v635_v14 = vadd.f32 %v630_v12, %v587_v3 }
 0x21d   :  { %v619_v13 = vpop.f32.mrf.mxu2  ;;  %v632_v11 = vpop.f32.mrf.mxu3 }
 0x24e   :  { %v673_v17 = vpop.f32.mrf.mxu0  ;;  %v686_v18 = vpop.f32.mrf.mxu1 }
 0x24f   :  { %v690_v20 = vadd.f32 %v673_v17, %v634_v42  ;;  %v691_v27 = vadd.f32 %v686_v18, %v635_v14 }
 0x251   :  { %v698_v28 = vadd.f32 %v696_v15, %v690_v20  ;;  %v699_v9 = vadd.f32 %v696_v15, %v691_v27 }
 0x253   :  { %v700_v31 = vmax.f32 %v698_v28, 0.0  ;;  %v701_v35 = vmax.f32 %v699_v9, 0.0 }
 0x255   :  { %v702_v40 = vpack.c.bf16 %v701_v35, %v700_v31 }
 0x256   :  { %v675_v24 = vpop.f32.mrf.mxu0  ;;  %v688_v41 = vpop.f32.mrf.mxu1 }
 0x257   :  { %712 = vrot.lane.b32.xlu2 %v702_v40, %s1308_s24  ;;  %704 = vrot.lane.b32.xlu1 %v702_v40, %s1306_s22 }
 0x25f   :  { %716 = vrot.lane.b32.xlu1 %v702_v40, %s1307_s23 }
 0x2b1   :  { %v713_v29 = vpop.permute.xlu2 %712 }
 0x2c9   :  { %v705_v45 = vpop.permute.xlu1 %704 }
 0x2ca   :  { %v706_v26 = vrot.slane %v705_v45, 4 }
 0x2cc   :  { %v707_v46 = vsel %vm2095_vm11, %v706_v26, %v705_v45  ;;  %711 = vst.msk [vmem:[#allocation2 + $0x8] sm:$0xf] %vm2096_vm6, %v706_v26  ;;  %vm2101_vm11 = vmpackc.low %vm1436_vm3, %vm1431_vm2  ;;  %vm2106_vm3 = vcmask 1039360  }
 0x2cd   :  { %710 = vst.msk [vmem:[#allocation2] sm:$0xff] %vm1376_vm13, %v707_v46  ;;  %vm2099_vm13 = vcmask 15360   ;;  %vm2104_vm6 = vmpackc.low %vm2102_vm0, %vm2103_vm1 }
 0x2ce   :  { %715 = vst.msk [vmem:[#allocation2] sm:$0xf] %vm2097_vm8, %v713_v29  ;;  %vm2105_vm2 = vmpackc.low %vm1557_vm10, %vm1552_vm15  ;;  %vm2107_vm8 = vcmask 1043456   ;;  %vm2109_vm10 = vnez %v2037_v62  ;;  %vm2110_vm15 = vnez %v2035_v61 }
 0x2cf   :  { %vm2114_vm0 = vmmov %vm2107_vm8 }
 0x2d0   :  { %vm2115_vm1 = vmmov %vm2106_vm3 }
 0x2d1   :  { %v717_v30 = vpop.permute.xlu1 %716 }
 0x2d2   :  { %v718_v51 = vrot.slane %v717_v30, 4 }
 0x2d4   :  { %720 = vst.msk [vmem:[#allocation2 + $0x8] sm:$0xf] %vm2098_vm14, %v718_v51  ;;  %vm2108_vm14 = vmmov %vm2099_vm13 }
 0x2d5   :  { %v1765_v52 = vld [vmem:[#allocation2] sm:$0xff] }
 0x2d6   :  { %724 = vrot.lane.b32.xlu2 %v1765_v52, %s1309_s25  ;;  %v746_v53 = vunpack.c.l.b16 %v1765_v52  ;;  %v747_v55 = vunpack.c.h.b16 %v1765_v52 }
 0x2d8   :  { %v1770_v54 = vpack.c.b16 %v746_v53, %v746_v53  ;;  %v1779_v58 = vpack.c.b16 %v747_v55, %v747_v55 }
 0x2da   :  { %752 = vrot.lane.b32.xlu1 %v1770_v54, %s1312_s28 }
 0x2db   :  { %v1775_v16 = vld [vmem:[#allocation2 + $0x8] sm:$0xf] }
 0x2dc   :  { %890 = vrot.lane.b32.xlu0 %v1775_v16, %s1309_s25  ;;  %v748_v19 = vunpack.c.l.b16 %v1775_v16 }
 0x2de   :  { %754 = vrot.lane.b32.xlu2 %v1779_v58, %s1312_s28  ;;  %v1786_v34 = vpack.c.b16 %v748_v19, %v748_v19 }
 0x2e2   :  { %733 = vrot.lane.b32.xlu1 %v1765_v52, %s1313_s29 }
 0x2e4   :  { %756 = vrot.lane.b32.xlu0 %v1786_v34, %s1312_s28 }
 0x2e6   :  { %735 = vrot.lane.b32.xlu2 %v1775_v16, %s1313_s29 }
 0x330   :  { %v725_v22 = vpop.permute.xlu2 %724 }
 0x331   :  { %v726_v47 = vrot.slane %v725_v22, 4 }
 0x333   :  { %v727_v63 = vsel %vm2099_vm13, %v726_v47, %v725_v22  ;;  %v731_v0 = vsel %vm2100_vm5, %v1775_v16, %v726_v47  ;;  %vm2111_vm13 = vmpackc.low %vm2109_vm10, %vm2110_vm15  ;;  %vm2112_vm5 = vnez %v2055_v56  ;;  %vm2122_vm10 = vnez %v2045_v33 }
 0x334   :  { %v730_v1 = vsel %vm2101_vm11, %v1765_v52, %v727_v63  ;;  %v799_v2 = vunpack.c.l.b16 %v731_v0  ;;  %v894_v36 = vsel %vm2104_vm6, %v1765_v52, %v727_v63  ;;  %v1056_v59 = vsel %vm2105_vm2, %v1765_v52, %v727_v63  ;;  %vm2113_vm11 = vmpackc.low %vm1593_vm9, %vm2112_vm5 }
 0x335   :  { %v798_v3 = vunpack.c.h.b16 %v730_v1  ;;  %v797_v4 = vunpack.c.l.b16 %v730_v1  ;;  %v904_v37 = vunpack.c.h.b16 %v894_v36  ;;  %v903_v38 = vunpack.c.l.b16 %v894_v36  ;;  %vm2117_vm2 = vmmov %vm2114_vm0  ;;  %v743_v36 = vld [vmem:[%s1984_s3] sm:$0xf] }
 0x336   :  { %v802_v5 = vpack.c.b16 %v799_v2, %v799_v2  ;;  %v1065_v12 = vunpack.c.h.b16 %v1056_v59  ;;  %v1064_v13 = vunpack.c.l.b16 %v1056_v59  ;;  %vm2116_vm6 = vcmask 1031168  }
 0x337   :  { %v801_v6 = vpack.c.b16 %v798_v3, %v798_v3  ;;  %v800_v7 = vpack.c.b16 %v797_v4, %v797_v4  ;;  %v907_v39 = vpack.c.b16 %v904_v37, %v904_v37  ;;  %v906_v8 = vpack.c.b16 %v903_v38, %v903_v38 }
 0x338   :  { %807 = vrot.lane.b32.xlu2 %v802_v5, %s1313_s29  ;;  %v755_v60 = vpop.permute.xlu2 %754  ;;  %v1068_v44 = vpack.c.b16 %v1065_v12, %v1065_v12  ;;  %v1067_v43 = vpack.c.b16 %v1064_v13, %v1064_v13  ;;  %vm2119_vm9 = vnez %v2041_v25  ;;  %vm2123_vm15 = vnez %v2043_v32  ;;  %v1270_v13 = vld [vmem:[%s1984_s3 + $0x10] sm:$0xf] }
 0x339   :  { %805 = vrot.lane.b32.xlu1 %v801_v6, %s1313_s29  ;;  %803 = vrot.lane.b32.xlu0 %v800_v7, %s1313_s29  ;;  %vm2125_vm5 = vnez %v2069_v50 }
 0x340   :  { %960 = vrot.lane.b32.xlu2 %v1786_v34, %s1317_s8  ;;  %v736_v27 = vpop.permute.xlu2 %735 }
 0x341   :  { %958 = vrot.lane.b32.xlu1 %v1779_v58, %s1317_s8  ;;  %956 = vrot.lane.b32.xlu0 %v1770_v54, %s1317_s8  ;;  %v738_v62 = vrot.slane %v736_v27, 4 }
 0x349   :  { %911 = vrot.lane.b32.xlu1 %v907_v39, %s1316_s7  ;;  %909 = vrot.lane.b32.xlu0 %v906_v8, %s1316_s7 }
 0x34c   :  { %v753_v11 = vpop.permute.xlu1 %752 }
 0x34d   :  { %v758_v42 = vsel %vm2106_vm3, %v753_v11, %v755_v60  ;;  %vm2118_vm3 = vnez %v2019_v10 }
 0x34e   :  { %v764_v14 = vsel %vm2107_vm8, %v758_v42, 0  ;;  %v891_v15 = vpop.permute.xlu0 %890  ;;  %vm2120_vm8 = vnez %v2039_v23 }
 0x34f   :  { %v892_v17 = vsel %vm2108_vm14, %v726_v47, %v891_v15  ;;  %776 = vmatpush.bf16.msra.mxu2 %v764_v14  ;;  %vm2121_vm14 = vmpackc.low %vm2119_vm9, %vm2120_vm8  ;;  %vm2133_vm8 = vcmask 64512  }
 0x350   :  { %v895_v18 = vsel %vm2111_vm13, %v1775_v16, %v892_v17  ;;  %v1057_v9 = vsel %vm2113_vm11, %v1775_v16, %v892_v17  ;;  %vm2124_vm13 = vmpackc.low %vm2122_vm10, %vm2123_vm15  ;;  %vm2126_vm11 = vnez %v2067_v49 }
 0x351   :  { %v905_v20 = vunpack.c.l.b16 %v895_v18  ;;  %1072 = vrot.lane.b32.xlu1 %v1068_v44, %s1319_s10  ;;  %1070 = vrot.lane.b32.xlu0 %v1067_v43, %s1319_s10  ;;  %v1066_v40 = vunpack.c.l.b16 %v1057_v9  ;;  %v898_v10 = vsel %vm2124_vm13, %v1775_v16, %v736_v27  ;;  %vm2135_vm10 = vmmov %vm2133_vm8  ;;  %vm2137_vm13 = vcmask 1031168   ;;  %v1267_v18 = vld [vmem:[%s1984_s3 + $0xc] sm:$0xf] }
 0x352   :  { %v1007_v47 = vunpack.c.l.b16 %v898_v10  ;;  %vm2136_vm15 = vmmov %vm2133_vm8 }
 0x353   :  { %v908_v28 = vpack.c.b16 %v905_v20, %v905_v20  ;;  %v1069_v53 = vpack.c.b16 %v1066_v40, %v1066_v40 }
 0x354   :  { %v734_v31 = vpop.permute.xlu1 %733  ;;  %v1010_v50 = vpack.c.b16 %v1007_v47, %v1007_v47 }
 0x355   :  { %v737_v35 = vrot.slane %v734_v31, 4  ;;  %913 = vrot.lane.b32.xlu2 %v908_v28, %s1316_s7 }
 0x356   :  { %v757_v61 = vpop.permute.xlu0 %756 }
 0x357   :  { %v739_v24 = vsel %vm2114_vm0, %v737_v35, %v738_v62  ;;  %v759_v41 = vsel %vm2115_vm1, %v755_v60, %v757_v61  ;;  %vm2127_vm0 = vmpackc.low %vm2125_vm5, %vm2126_vm11  ;;  %v1276_v61 = vld [vmem:[%s1984_s3 + $0x18] sm:$0xf] }
 0x358   :  { %v740_v45 = vsel %vm2116_vm6, %v734_v31, %v739_v24  ;;  %v767_v26 = vsel %vm2117_vm2, %v759_v41, 0  ;;  %vm2128_vm1 = vmmov %vm2117_vm2  ;;  %vm2130_vm2 = vnez %v2065_v48  ;;  %v1259_v48 = vld [vmem:[%s1984_s3 + $0x4] sm:$0xf] }
 0x359   :  { %v742_v56 = vsel %vm2118_vm3, %v1765_v52, %v740_v45  ;;  %v897_v57 = vsel %vm2121_vm14, %v1765_v52, %v740_v45  ;;  %789 = vmatpush.bf16.msra.mxu3 %v767_v26  ;;  %v1058_v23 = vsel %vm2127_vm0, %v1765_v52, %v740_v45  ;;  %vm2129_vm6 = vmmov %vm2128_vm1  ;;  %vm2131_vm3 = vnez %v2063_v21  ;;  %v1217_v21 = vld [vmem:[%s1983_s4] sm:$0xff] }
 0x35a   :  { %v849_v46 = vunpack.c.l.b16 %v742_v56  ;;  %v850_v29 = vunpack.c.h.b16 %v742_v56  ;;  %v1006_v30 = vunpack.c.h.b16 %v897_v57  ;;  %v1005_v51 = vunpack.c.l.b16 %v897_v57  ;;  %vm2132_vm9 = vmpackc.low %vm2130_vm2, %vm2131_vm3  ;;  %1260 = vmatmul.msk.bf16.vlgmr.msra.gmra.mxu2 %vm2133_vm8, %v1259_v48 }
 0x35b   :  { %v1167_v63 = vunpack.c.h.b16 %v1058_v23  ;;  %v1166_v0 = vunpack.c.l.b16 %v1058_v23  ;;  %v1059_v49 = vsel %vm2132_vm9, %v1775_v16, %v736_v27  ;;  %vm2134_vm14 = vmmov %vm2133_vm8  ;;  %vm2143_vm2 = vcmask 908288  }
 0x35c   :  { %v1009_v55 = vpack.c.b16 %v1006_v30, %v1006_v30  ;;  %v1008_v19 = vpack.c.b16 %v1005_v51, %v1005_v51  ;;  %v851_v25 = vpack.c.b16 %v849_v46, %v849_v46  ;;  %v852_v22 = vpack.c.b16 %v850_v29, %v850_v29  ;;  %1261 = vmatmul.msk.bf16.vlgmr.msra.gmra.mxu3 %vm2134_vm14, %v1259_v48  ;;  %vm2138_vm5 = vmmov %vm2137_vm13  ;;  %v1273_v46 = vld [vmem:[%s1984_s3 + $0x14] sm:$0xf] }
 0x35d   :  { %1074 = vrot.lane.b32.xlu2 %v1069_v53, %s1319_s10  ;;  %v1170_v52 = vpack.c.b16 %v1167_v63, %v1167_v63  ;;  %v1169_v1 = vpack.c.b16 %v1166_v0, %v1166_v0  ;;  %v1168_v2 = vunpack.c.l.b16 %v1059_v49  ;;  %vm2139_vm11 = vmmov %vm2128_vm1 }
 0x35e   :  { %1013 = vrot.lane.b32.xlu1 %v1009_v55, %s1318_s9  ;;  %1011 = vrot.lane.b32.xlu0 %v1008_v19, %s1318_s9  ;;  %v857_v32 = vsel %vm2128_vm1, %v851_v25, 0  ;;  %v860_v33 = vsel %vm2129_vm6, %v852_v22, 0  ;;  %vm2140_vm0 = vmmov %vm2128_vm1  ;;  %v1282_v25 = vld [vmem:[%s1984_s3 + $0x20] sm:$0xf] }
 0x35f   :  { %869 = vmatpush.bf16.msrb.mxu2 %v857_v32  ;;  %882 = vmatpush.bf16.msrb.mxu3 %v860_v33  ;;  %v1171_v3 = vpack.c.b16 %v1168_v2, %v1168_v2  ;;  %vm2141_vm1 = vmmov %vm2133_vm8 }
 0x360   :  { %vm2142_vm6 = vmmov %vm2141_vm1 }
 0x361   :  { %vm2144_vm3 = vmmov %vm2143_vm2 }
 0x362   :  { %vm2145_vm9 = vmmov %vm2140_vm0 }
 0x363   :  { %vm2146_vm8 = vmmov %vm2140_vm0 }
 0x364   :  { %vm2147_vm14 = vmmov %vm2141_vm1 }
 0x365   :  { %1015 = vrot.lane.b32.xlu2 %v1010_v50, %s1318_s9  ;;  %v1279_v50 = vld [vmem:[%s1984_s3 + $0x1c] sm:$0xf] }
 0x366   :  { %1174 = vrot.lane.b32.xlu1 %v1170_v52, %s1321_s14  ;;  %1172 = vrot.lane.b32.xlu0 %v1169_v1, %s1321_s14 }
 0x36d   :  { %1176 = vrot.lane.b32.xlu2 %v1171_v3, %s1321_s14 }
 0x36e   :  { %1119 = vrot.lane.b32.xlu1 %v1779_v58, %s1320_s11  ;;  %1117 = vrot.lane.b32.xlu0 %v1770_v54, %s1320_s11  ;;  %v1264_v54 = vld [vmem:[%s1984_s3 + $0x8] sm:$0xf] }
 0x36f   :  { %1265 = vmatmul.msk.bf16.vlgmr.msrb.gmra.mxu2 %vm2135_vm10, %v1264_v54  ;;  %1266 = vmatmul.msk.bf16.vlgmr.msrb.gmra.mxu3 %vm2136_vm15, %v1264_v54  ;;  %vm2148_vm10 = vmmov %vm2141_vm1  ;;  %vm2149_vm15 = vcmask 900096  }
 0x375   :  { %1121 = vrot.lane.b32.xlu2 %v1786_v34, %s1320_s11 }
 0x376   :  { %1220 = vperm.xlu0 %1302, %v1217_v21  }
 0x392   :  { %v808_v16 = vpop.permute.xlu2 %807 }
 0x39a   :  { %v961_v37 = vpop.permute.xlu2 %960 }
 0x3ab   :  { %v804_v58 = vpop.permute.xlu0 %803  ;;  %v806_v34 = vpop.permute.xlu1 %805 }
 0x3ac   :  { %v809_v4 = vsel %vm2137_vm13, %v804_v58, %v806_v34  ;;  %v810_v5 = vsel %vm2138_vm5, %v806_v34, %v808_v16  ;;  %vm2150_vm13 = vmmov %vm2149_vm15 }
 0x3ad   :  { %v815_v6 = vsel %vm2139_vm11, %v809_v4, 0  ;;  %v818_v7 = vsel %vm2140_vm0, %v810_v5, 0  ;;  %vm2151_vm5 = vmmov %vm2140_vm0 }
 0x3ae   :  { %827 = vmatpush.bf16.msrb.mxu0 %v815_v6  ;;  %840 = vmatpush.bf16.msrb.mxu1 %v818_v7  ;;  %vm2152_vm11 = vmmov %vm2140_vm0 }
 0x3af   :  { %v914_v11 = vpop.permute.xlu2 %913  ;;  %vm2153_vm0 = vmmov %vm2141_vm1 }
 0x3b1   :  { %1262 = vmatmul.msk.bf16.vlgmr.msrb.gmra.mxu0 %vm2141_vm1, %v743_v36  ;;  %1263 = vmatmul.msk.bf16.vlgmr.msrb.gmra.mxu1 %vm2142_vm6, %v743_v36  ;;  %vm2154_vm1 = vmmov %vm2153_vm0 }
 0x3b2   :  { %vm2155_vm6 = vmmov %vm2151_vm5 }
 0x3b3   :  { %v957_v38 = vpop.permute.xlu0 %956  ;;  %v959_v39 = vpop.permute.xlu1 %958 }
 0x3b4   :  { %v962_v8 = vsel %vm2143_vm2, %v957_v38, %v959_v39  ;;  %v963_v59 = vsel %vm2144_vm3, %v959_v39, %v961_v37  ;;  %vm2156_vm2 = vmmov %vm2151_vm5 }
 0x3b5   :  { %v968_v60 = vsel %vm2145_vm9, %v962_v8, 0  ;;  %v971_v12 = vsel %vm2146_vm8, %v963_v59, 0  ;;  %vm2157_vm3 = vmmov %vm2153_vm0  ;;  %vm2159_vm8 = vcmask 916480  }
 0x3b6   :  { %980 = vmatpush.bf16.msra.mxu2 %v968_v60  ;;  %993 = vmatpush.bf16.msra.mxu3 %v971_v12  ;;  %vm2158_vm9 = vmmov %vm2153_vm0 }
 0x3b7   :  { %v1075_v20 = vpop.permute.xlu2 %1074 }
 0x3b9   :  { %1271 = vmatmul.msk.bf16.vlgmr.msra.gmra.mxu2 %vm2147_vm14, %v1270_v13  ;;  %1272 = vmatmul.msk.bf16.vlgmr.msra.gmra.mxu3 %vm2148_vm10, %v1270_v13  ;;  %vm2161_vm14 = vmmov %vm2156_vm2 }
 0x3ba   :  { %vm2162_vm10 = vmmov %vm2156_vm2 }
 0x3bb   :  { %v910_v42 = vpop.permute.xlu0 %909  ;;  %v912_v14 = vpop.permute.xlu1 %911 }
 0x3bc   :  { %v915_v15 = vsel %vm2149_vm15, %v910_v42, %v912_v14  ;;  %v916_v17 = vsel %vm2150_vm13, %v912_v14, %v914_v11  ;;  %vm2163_vm15 = vmmov %vm2153_vm0 }
 0x3bd   :  { %v921_v44 = vsel %vm2151_vm5, %v915_v15, 0  ;;  %v924_v43 = vsel %vm2152_vm11, %v916_v17, 0  ;;  %vm2164_vm13 = vmmov %vm2153_vm0 }
 0x3be   :  { %933 = vmatpush.bf16.msra.mxu0 %v921_v44  ;;  %946 = vmatpush.bf16.msra.mxu1 %v924_v43  ;;  %vm2165_vm5 = vmmov %vm2156_vm2 }
 0x3bf   :  { %v1016_v40 = vpop.permute.xlu2 %1015  ;;  %vm2166_vm11 = vmmov %vm2156_vm2 }
 0x3c1   :  { %1268 = vmatmul.msk.bf16.vlgmr.msra.gmra.mxu0 %vm2153_vm0, %v1267_v18  ;;  %1269 = vmatmul.msk.bf16.vlgmr.msra.gmra.mxu1 %vm2154_vm1, %v1267_v18  ;;  %vm2167_vm1 = vmmov %vm2153_vm0 }
 0x3c3   :  { %v1071_v27 = vpop.permute.xlu0 %1070  ;;  %v1073_v28 = vpop.permute.xlu1 %1072 }
 0x3c4   :  { %v1076_v9 = vsel %vm548_vm4, %v1071_v27, %v1073_v28  ;;  %v1077_v31 = vsel %vm548_vm4, %v1073_v28, %v1075_v20  ;;  %vm2160_vm4 = vmmov %vm2159_vm8 }
 0x3c5   :  { %v1082_v62 = vsel %vm2155_vm6, %v1076_v9, 0  ;;  %v1085_v35 = vsel %vm2156_vm2, %v1077_v31, 0  ;;  %vm2169_vm6 = vmmov %vm2156_vm2 }
 0x3c6   :  { %1094 = vmatpush.bf16.msrb.mxu2 %v1082_v62  ;;  %1107 = vmatpush.bf16.msrb.mxu3 %v1085_v35 }
 0x3c7   :  { %v1177_v29 = vpop.permute.xlu2 %1176 }
 0x3c9   :  { %1277 = vmatmul.msk.bf16.vlgmr.msrb.gmra.mxu2 %vm2157_vm3, %v1276_v61  ;;  %1278 = vmatmul.msk.bf16.vlgmr.msrb.gmra.mxu3 %vm2158_vm9, %v1276_v61  ;;  %vm2171_vm3 = vmmov %vm2153_vm0 }
 0x3cf   :  { %v1122_v22 = vpop.permute.xlu2 %1121 }
 0x3d0   :  { %v1012_v24 = vpop.permute.xlu0 %1011  ;;  %v1014_v41 = vpop.permute.xlu1 %1013 }
 0x3d1   :  { %v1017_v45 = vsel %vm2159_vm8, %v1012_v24, %v1014_v41  ;;  %v1018_v26 = vsel %vm2160_vm4, %v1014_v41, %v1016_v40 }
 0x3d2   :  { %v1023_v56 = vsel %vm2161_vm14, %v1017_v45, 0  ;;  %v1026_v57 = vsel %vm2162_vm10, %v1018_v26, 0 }
 0x3d3   :  { %1035 = vmatpush.bf16.msrb.mxu0 %v1023_v56  ;;  %1048 = vmatpush.bf16.msrb.mxu1 %v1026_v57 }
 0x3d6   :  { %1274 = vmatmul.msk.bf16.vlgmr.msrb.gmra.mxu0 %vm2163_vm15, %v1273_v46  ;;  %1275 = vmatmul.msk.bf16.vlgmr.msrb.gmra.mxu1 %vm2164_vm13, %v1273_v46 }
 0x3d8   :  { %v1173_v30 = vpop.permute.xlu0 %1172  ;;  %v1175_v51 = vpop.permute.xlu1 %1174 }
 0x3d9   :  { %v1178_v10 = vsel %vm652_vm12, %v1173_v30, %v1175_v51  ;;  %v1179_v53 = vsel %vm652_vm12, %v1175_v51, %v1177_v29  ;;  %vm2168_vm12 = vmmov %vm2156_vm2 }
 0x3da   :  { %v1184_v55 = vsel %vm2165_vm5, %v1178_v10, 0  ;;  %v1187_v19 = vsel %vm2166_vm11, %v1179_v53, 0  ;;  %vm2170_vm2 = vmmov %vm2153_vm0 }
 0x3db   :  { %1196 = vmatpush.bf16.msra.mxu2 %v1184_v55  ;;  %1209 = vmatpush.bf16.msra.mxu3 %v1187_v19  ;;  %v1303_v55 = vld [vmem:[%s1980_s0] sm:$0xff] }
 0x3dd   :  { %v778_v49 = vpop.f32.mrf.mxu2 }
 0x3de   :  { %1283 = vmatmul.msk.bf16.vlgmr.msra.gmra.mxu2 %vm2153_vm0, %v1282_v25  ;;  %1284 = vmatmul.msk.bf16.vlgmr.msra.gmra.mxu3 %vm2167_vm1, %v1282_v25  ;;  %v1304_v25 = vld [vmem:[%s1980_s0 + $0x8] sm:$0xff] }
 0x3df   :  { %v791_v52 = vpop.f32.mrf.mxu3 }
 0x3e0   :  { %v1118_v23 = vpop.permute.xlu0 %1117  ;;  %v1120_v32 = vpop.permute.xlu1 %1119 }
 0x3e1   :  { %v1123_v33 = vsel %vm596_vm7, %v1118_v23, %v1120_v32  ;;  %v1124_v47 = vsel %vm596_vm7, %v1120_v32, %v1122_v22 }
 0x3e2   :  { %v1129_v63 = vsel %vm2168_vm12, %v1123_v33, 0  ;;  %v1132_v0 = vsel %vm2169_vm6, %v1124_v47, 0 }
 0x3e3   :  { %1141 = vmatpush.bf16.msra.mxu0 %v1129_v63  ;;  %1154 = vmatpush.bf16.msra.mxu1 %v1132_v0 }
 0x3e5   :  { %v780_v1 = vpop.f32.mrf.mxu2 }
 0x3e6   :  { %1280 = vmatmul.msk.bf16.vlgmr.msra.gmra.mxu0 %vm2170_vm2, %v1279_v50  ;;  %1281 = vmatmul.msk.bf16.vlgmr.msra.gmra.mxu1 %vm2171_vm3, %v1279_v50 }
 0x3e7   :  { %v793_v2 = vpop.f32.mrf.mxu3 }
 0x3e8   :  { %v1221_v29 = vpop.permute.xlu0 %1220 }
 0x3f2   :  { %v871_v3 = vpop.f32.mrf.mxu2  ;;  %v884_v21 = vpop.f32.mrf.mxu3 }
 0x3fa   :  { %v873_v48 = vpop.f32.mrf.mxu2  ;;  %v886_v54 = vpop.f32.mrf.mxu3 }
 0x42e   :  { %v829_v16 = vpop.f32.mrf.mxu0  ;;  %v842_v58 = vpop.f32.mrf.mxu1 }
 0x42f   :  { %v830_v34 = vadd.f32 %v829_v16, %v778_v49  ;;  %v843_v4 = vadd.f32 %v842_v58, %v791_v52 }
 0x431   :  { %v888_v5 = vadd.f32 %v871_v3, %v830_v34  ;;  %v889_v6 = vadd.f32 %v884_v21, %v843_v4 }
 0x436   :  { %v831_v7 = vpop.f32.mrf.mxu0  ;;  %v844_v36 = vpop.f32.mrf.mxu1 }
 0x43c   :  { %v982_v37 = vpop.f32.mrf.mxu2  ;;  %v995_v38 = vpop.f32.mrf.mxu3 }
 0x43e   :  { %v935_v39 = vpop.f32.mrf.mxu0  ;;  %v948_v8 = vpop.f32.mrf.mxu1 }
 0x43f   :  { %v952_v43 = vadd.f32 %v935_v39, %v888_v5  ;;  %v953_v18 = vadd.f32 %v948_v8, %v889_v6 }
 0x441   :  { %v999_v28 = vadd.f32 %v982_v37, %v952_v43  ;;  %v1000_v9 = vadd.f32 %v995_v38, %v953_v18 }
 0x444   :  { %v984_v59 = vpop.f32.mrf.mxu2  ;;  %v997_v60 = vpop.f32.mrf.mxu3 }
 0x446   :  { %v937_v12 = vpop.f32.mrf.mxu0  ;;  %v950_v13 = vpop.f32.mrf.mxu1 }
 0x44c   :  { %v1096_v11 = vpop.f32.mrf.mxu2  ;;  %v1109_v42 = vpop.f32.mrf.mxu3 }
 0x453   :  { %v1037_v14 = vpop.f32.mrf.mxu0  ;;  %v1050_v15 = vpop.f32.mrf.mxu1 }
 0x454   :  { %v1098_v17 = vpop.f32.mrf.mxu2  ;;  %v1111_v44 = vpop.f32.mrf.mxu3  ;;  %v1054_v31 = vadd.f32 %v1037_v14, %v999_v28  ;;  %v1055_v62 = vadd.f32 %v1050_v15, %v1000_v9 }
 0x456   :  { %v1113_v40 = vadd.f32 %v1096_v11, %v1054_v31  ;;  %v1114_v24 = vadd.f32 %v1109_v42, %v1055_v62 }
 0x45b   :  { %v1039_v20 = vpop.f32.mrf.mxu0  ;;  %v1052_v27 = vpop.f32.mrf.mxu1 }
 0x461   :  { %v1198_v35 = vpop.f32.mrf.mxu2  ;;  %v1211_v61 = vpop.f32.mrf.mxu3 }
 0x463   :  { %v1143_v41 = vpop.f32.mrf.mxu0  ;;  %v1156_v45 = vpop.f32.mrf.mxu1 }
 0x464   :  { %v1160_v26 = vadd.f32 %v1143_v41, %v1113_v40  ;;  %v1161_v56 = vadd.f32 %v1156_v45, %v1114_v24 }
 0x466   :  { %v1215_v57 = vadd.f32 %v1198_v35, %v1160_v26  ;;  %v1216_v46 = vadd.f32 %v1211_v61, %v1161_v56 }
 0x468   :  { %v1223_v30 = vadd.f32 %v1221_v29, %v1215_v57  ;;  %v1224_v51 = vadd.f32 %v1221_v29, %v1216_v46 }
 0x469   :  { %v1200_v10 = vpop.f32.mrf.mxu2  ;;  %v1213_v53 = vpop.f32.mrf.mxu3 }
 0x46a   :  { %v1225_v19 = vadd.f32 %v1303_v55, %v1223_v30  ;;  %v1226_v22 = vadd.f32 %v1304_v25, %v1224_v51 }
 0x46b   :  { %v1145_v23 = vpop.f32.mrf.mxu0  ;;  %v1158_v32 = vpop.f32.mrf.mxu1 }
 0x46c   :  { %1227 = vst [vmem:[%s1985_s5] sm:$0xff] %v1225_v19 }
 0x46d   :  { %1228 = vst [vmem:[%s1985_s5 + $0x8] sm:$0xff] %v1226_v22 }

</bundles_post_ra>
